<compile_context>
chip_gen: v7x
topology: tpu7x:2x2x1
jax: 0.10.0
libtpu: 0.0.40
codegen_flags: <defaults>
</compile_context>

<pallas_src>
import functools

import jax
import jax.numpy as jnp
from jax.experimental import pallas as pl
from jax.experimental.pallas import tpu as pltpu


def _round_up(x, m):
    return ((x + m - 1) // m) * m


def _leaky_relu(x, slope=0.2):
    # One vmul + one vmax (cheaper than cmp/select/mul).
    return jnp.maximum(x, slope * x)


def _decoder_chain(z, w1, b1, w2, b2, w3, b3, w4, b4):
    """4-layer decoder on one batch chunk.  z / weights bf16, biases f32;
    MXU dots accumulate in f32, bias + LeakyReLU run in f32 on the VPU."""
    h = jnp.dot(z, w1, preferred_element_type=jnp.float32)
    h = _leaky_relu(h + b1).astype(jnp.bfloat16)
    h = jnp.dot(h, w2, preferred_element_type=jnp.float32)
    h = _leaky_relu(h + b2).astype(jnp.bfloat16)
    h = jnp.dot(h, w3, preferred_element_type=jnp.float32)
    h = _leaky_relu(h + b3).astype(jnp.bfloat16)
    h = jnp.dot(h, w4, preferred_element_type=jnp.float32)
    return h + b4


def ae_decoder_kernel(z_ref,
                      w1_ref, b1_ref,
                      w2_ref, b2_ref,
                      w3_ref, b3_ref,
                      w4_ref, b4_ref,
                      out_ref, *, row_chunks):
    # Hoist the resident weight/bias loads once per grid step.
    w1, b1 = w1_ref[...], b1_ref[...]
    w2, b2 = w2_ref[...], b2_ref[...]
    w3, b3 = w3_ref[...], b3_ref[...]
    w4, b4 = w4_ref[...], b4_ref[...]
    # Two independent half-tile chains (static slices): the dependent
    # 4-matmul chain of one half overlaps the MXU drain / VPU epilogue of
    # the other.  row_chunks is a static tuple of (start, stop) row ranges.
    for r0, r1 in row_chunks:
        out = _decoder_chain(z_ref[r0:r1, :], w1, b1, w2, b2, w3, b3, w4, b4)
        out_ref[r0:r1, :] = out.astype(out_ref.dtype)


def _choose_block_batch(B):
    # Keep >=2 grid steps when B allows it (v7x two-TC sharding), cap the
    # tile at 1024 rows, keep it a multiple of 16 (bf16 sublane packing).
    return max(16, min(1024, _round_up(pl.cdiv(B, 2), 16)))


def ae_decoder_forward(z, kparams, *, block_batch=None):
    """z: [B, n_z] f32 (or bf16).  kparams: output of prepare_decoder_params
    (weights [in_pad, out_pad] bf16, biases [1, out_pad] f32)."""
    B, n_z = z.shape
    assert kparams["w1"].shape[0] == n_z
    n_input = kparams["w4"].shape[1]

    TB = _choose_block_batch(B) if block_batch is None else max(
        16, _round_up(block_batch, 16))
    num_tiles = pl.cdiv(B, TB)

    # Static half-tile split (16-row aligned so bf16 sublane packing is clean).
    h0 = (TB // 2 // 16) * 16
    row_chunks = ((0, h0), (h0, TB)) if 0 < h0 < TB else ((0, TB),)

    # bf16 z: native MXU operand dtype, halves the input DMA.
    z_bf16 = z.astype(jnp.bfloat16)

    def resident(p):
        # Weights/biases stay VMEM-resident across all grid steps.
        return pl.BlockSpec(p.shape, lambda i: (0, 0))

    in_specs = [
        pl.BlockSpec((TB, n_z), lambda i: (i, 0)),   # z: streamed per tile
        resident(kparams["w1"]), resident(kparams["b1"]),
        resident(kparams["w2"]), resident(kparams["b2"]),
        resident(kparams["w3"]), resident(kparams["b3"]),
        resident(kparams["w4"]), resident(kparams["b4"]),
    ]
    # Lane-dense output tile, full n_input wide; last grid step is a partial
    # block and Pallas clips the writeback to B rows (no pad/slice round-trip).
    out_specs = pl.BlockSpec((TB, n_input), lambda i: (i, 0))

    kernel = functools.partial(ae_decoder_kernel, row_chunks=row_chunks)

    return pl.pallas_call(
        kernel,
        out_shape=jax.ShapeDtypeStruct((B, n_input), jnp.float32),
        grid_spec=pl.GridSpec(
            grid=(num_tiles,),
            in_specs=in_specs,
            out_specs=out_specs,
        ),
        compiler_params=pltpu.CompilerParams(
            dimension_semantics=("parallel",),   # shard batch tiles across TCs
        ),
    )(z_bf16,
      kparams["w1"], kparams["b1"],
      kparams["w2"], kparams["b2"],
      kparams["w3"], kparams["b3"],
      kparams["w4"], kparams["b4"])


def init_torch_params(key, ae_n_dec_1, ae_n_dec_2, ae_n_dec_3, n_input, n_z):
    """PyTorch Linear layout: W [out, in], b [out], f32, U(-1/sqrt(in), 1/sqrt(in))."""
    dims = [(ae_n_dec_1, n_z),
            (ae_n_dec_2, ae_n_dec_1),
            (ae_n_dec_3, ae_n_dec_2),
            (n_input, ae_n_dec_3)]
    p = {}
    for i, (out_d, in_d) in enumerate(dims, start=1):
        key, kw, kb = jax.random.split(key, 3)
        bound = 1.0 / (in_d ** 0.5)
        p[f"w{i}"] = jax.random.uniform(kw, (out_d, in_d), jnp.float32, -bound, bound)
        p[f"b{i}"] = jax.random.uniform(kb, (out_d,), jnp.float32, -bound, bound)
    return p


def prepare_decoder_params(tparams):
    """Kernel layout: W [in_pad, out_pad] bf16 (for x @ W), b [1, out_pad] f32.
    Hidden widths (outputs of layers 1-3) are zero-padded to multiples of 128
    so all intermediates are lane-dense; zero rows/cols (and LeakyReLU(0)=0)
    leave the math unchanged.  n_z and n_input are left as-is."""
    w = [tparams[f"w{i}"] for i in range(1, 5)]
    b = [tparams[f"b{i}"] for i in range(1, 5)]
    n_z = w[0].shape[1]
    d1, d2, d3, n_input = (wi.shape[0] for wi in w)
    d1p, d2p, d3p = (_round_up(d, 128) for d in (d1, d2, d3))
    in_dims = (n_z, d1p, d2p, d3p)
    out_dims = (d1p, d2p, d3p, n_input)
    kp = {}
    for i, (wi, bi, ind, outd) in enumerate(zip(w, b, in_dims, out_dims), start=1):
        wt = wi.T  # [in, out]
        wt = jnp.pad(wt, ((0, ind - wt.shape[0]), (0, outd - wt.shape[1])))
        kp[f"w{i}"] = wt.astype(jnp.bfloat16)
        bp = jnp.pad(bi, (0, outd - bi.shape[0]))
        kp[f"b{i}"] = bp.reshape(1, outd).astype(jnp.float32)
    return kp


def reference_forward_f32(z, tparams):
    """Pure-f32 reference of the original PyTorch module."""
    h = z
    for i in range(1, 4):
        h = h @ tparams[f"w{i}"].T + tparams[f"b{i}"]
        h = jnp.where(h > 0, h, 0.2 * h)
    return h @ tparams["w4"].T + tparams["b4"]


def reference_forward_matched(z, kparams):
    """Same math / precision regime as the kernel (bf16 operands, f32 accum)."""
    h = z.astype(jnp.bfloat16)
    for i in range(1, 4):
        h = jnp.dot(h, kparams[f"w{i}"], preferred_element_type=jnp.float32)
        h = h + kparams[f"b{i}"]
        h = jnp.maximum(h, 0.2 * h).astype(jnp.bfloat16)
    h = jnp.dot(h, kparams["w4"], preferred_element_type=jnp.float32)
    return h + kparams["b4"]


if __name__ == "__main__":
    # Decoder: n_z -> d1 -> d2 -> d3 -> n_input.
    # B=300 with the default TB heuristic gives 160-row tiles and 2 grid
    # steps (the second a partial block), exercising both the megacore split
    # and the clipped final-tile writeback.
    B, n_z = 300, 32
    ae_n_dec_1, ae_n_dec_2, ae_n_dec_3, n_input = 64, 64, 128, 256

    key = jax.random.PRNGKey(0)
    key, kz = jax.random.split(key)
    z = jax.random.normal(kz, (B, n_z), dtype=jnp.float32)

    tparams = init_torch_params(key, ae_n_dec_1, ae_n_dec_2, ae_n_dec_3,
                                n_input, n_z)
    kparams = prepare_decoder_params(tparams)

    x_hat = ae_decoder_forward(z, kparams)
    x_hat = jax.block_until_ready(x_hat)
    assert x_hat.shape == (B, n_input)

    # Kernel correctness vs a matched-precision reference (same bf16/f32 regime).
    ref_m = reference_forward_matched(z, kparams)
    assert jnp.allclose(x_hat, ref_m, atol=2e-3, rtol=2e-3), float(
        jnp.max(jnp.abs(x_hat - ref_m)))

    # Sanity vs the fp32 PyTorch-equivalent math (bf16 quantization tolerance).
    ref_f = reference_forward_f32(z, tparams)
    assert jnp.allclose(x_hat, ref_f, atol=1e-1, rtol=1e-1), float(
        jnp.max(jnp.abs(x_hat - ref_f)))

    print("KERNEL_OK")
</pallas_src>

<mosaic_0001>
module attributes {stable_mosaic.version = 11 : i64} {
  func.func @ae_decoder_kernel(%arg0: i32, %arg1: memref<160x32xbf16, #tpu.memory_space<vmem>>, %arg2: memref<32x128xbf16, #tpu.memory_space<vmem>>, %arg3: memref<1x128xf32, #tpu.memory_space<vmem>>, %arg4: memref<128x128xbf16, #tpu.memory_space<vmem>>, %arg5: memref<1x128xf32, #tpu.memory_space<vmem>>, %arg6: memref<128x128xbf16, #tpu.memory_space<vmem>>, %arg7: memref<1x128xf32, #tpu.memory_space<vmem>>, %arg8: memref<128x256xbf16, #tpu.memory_space<vmem>>, %arg9: memref<1x256xf32, #tpu.memory_space<vmem>>, %arg10: memref<160x256xf32, #tpu.memory_space<vmem>>) attributes {dimension_semantics = [#tpu.dimension_semantics<parallel>], iteration_bounds = array<i64: 2>, scalar_prefetch = 0 : i64, scratch_operands = 0 : i64, tpu.core_type = #tpu.core_type<tc>, window_params = [{transform_indices = @transform_0, window_bounds = array<i64: 160, 32>}, {pipeline_mode = #tpu.pipeline_mode<synchronous>, transform_indices = @transform_1, window_bounds = array<i64: 32, 128>}, {pipeline_mode = #tpu.pipeline_mode<synchronous>, transform_indices = @transform_2, window_bounds = array<i64: 1, 128>}, {pipeline_mode = #tpu.pipeline_mode<synchronous>, transform_indices = @transform_3, window_bounds = array<i64: 128, 128>}, {pipeline_mode = #tpu.pipeline_mode<synchronous>, transform_indices = @transform_4, window_bounds = array<i64: 1, 128>}, {pipeline_mode = #tpu.pipeline_mode<synchronous>, transform_indices = @transform_5, window_bounds = array<i64: 128, 128>}, {pipeline_mode = #tpu.pipeline_mode<synchronous>, transform_indices = @transform_6, window_bounds = array<i64: 1, 128>}, {pipeline_mode = #tpu.pipeline_mode<synchronous>, transform_indices = @transform_7, window_bounds = array<i64: 128, 256>}, {pipeline_mode = #tpu.pipeline_mode<synchronous>, transform_indices = @transform_8, window_bounds = array<i64: 1, 256>}, {transform_indices = @transform_9, window_bounds = array<i64: 160, 256>}]} {
    %c0 = arith.constant 0 : index
    %c0_0 = arith.constant 0 : index
    %0 = vector.load %arg2[%c0, %c0_0] : memref<32x128xbf16, #tpu.memory_space<vmem>>, vector<32x128xbf16>
    %c0_1 = arith.constant 0 : index
    %c0_2 = arith.constant 0 : index
    %1 = vector.load %arg3[%c0_1, %c0_2] : memref<1x128xf32, #tpu.memory_space<vmem>>, vector<1x128xf32>
    %c0_3 = arith.constant 0 : index
    %c0_4 = arith.constant 0 : index
    %2 = vector.load %arg4[%c0_3, %c0_4] : memref<128x128xbf16, #tpu.memory_space<vmem>>, vector<128x128xbf16>
    %c0_5 = arith.constant 0 : index
    %c0_6 = arith.constant 0 : index
    %3 = vector.load %arg5[%c0_5, %c0_6] : memref<1x128xf32, #tpu.memory_space<vmem>>, vector<1x128xf32>
    %c0_7 = arith.constant 0 : index
    %c0_8 = arith.constant 0 : index
    %4 = vector.load %arg6[%c0_7, %c0_8] : memref<128x128xbf16, #tpu.memory_space<vmem>>, vector<128x128xbf16>
    %c0_9 = arith.constant 0 : index
    %c0_10 = arith.constant 0 : index
    %5 = vector.load %arg7[%c0_9, %c0_10] : memref<1x128xf32, #tpu.memory_space<vmem>>, vector<1x128xf32>
    %c0_11 = arith.constant 0 : index
    %c0_12 = arith.constant 0 : index
    %6 = vector.load %arg8[%c0_11, %c0_12] : memref<128x256xbf16, #tpu.memory_space<vmem>>, vector<128x256xbf16>
    %c0_13 = arith.constant 0 : index
    %c0_14 = arith.constant 0 : index
    %7 = vector.load %arg9[%c0_13, %c0_14] : memref<1x256xf32, #tpu.memory_space<vmem>>, vector<1x256xf32>
    %c0_15 = arith.constant 0 : index
    %c0_16 = arith.constant 0 : index
    %8 = vector.load %arg1[%c0_15, %c0_16] : memref<160x32xbf16, #tpu.memory_space<vmem>>, vector<80x32xbf16>
    %cst = arith.constant dense<0.000000e+00> : vector<80x128xf32>
    %9 = tpu.matmul %8, %0, %cst {dimension_numbers = #tpu.dot_dimension_numbers<[1], [0], [0], [1], [0, 0, 1, 1], [], []>} : vector<80x32xbf16>, vector<32x128xbf16>, vector<80x128xf32> -> vector<80x128xf32>
    %10 = vector.broadcast %1 : vector<1x128xf32> to vector<80x128xf32>
    %11 = arith.addf %9, %10 : vector<80x128xf32>
    %cst_17 = arith.constant 2.000000e-01 : f32
    %12 = vector.broadcast %cst_17 : f32 to vector<80x128xf32>
    %13 = arith.mulf %12, %11 : vector<80x128xf32>
    %14 = arith.maximumf %11, %13 : vector<80x128xf32>
    %15 = arith.truncf %14 : vector<80x128xf32> to vector<80x128xbf16>
    %cst_18 = arith.constant dense<0.000000e+00> : vector<80x128xf32>
    %16 = tpu.matmul %15, %2, %cst_18 {dimension_numbers = #tpu.dot_dimension_numbers<[1], [0], [0], [1], [0, 0, 1, 1], [], []>} : vector<80x128xbf16>, vector<128x128xbf16>, vector<80x128xf32> -> vector<80x128xf32>
    %17 = vector.broadcast %3 : vector<1x128xf32> to vector<80x128xf32>
    %18 = arith.addf %16, %17 : vector<80x128xf32>
    %cst_19 = arith.constant 2.000000e-01 : f32
    %19 = vector.broadcast %cst_19 : f32 to vector<80x128xf32>
    %20 = arith.mulf %19, %18 : vector<80x128xf32>
    %21 = arith.maximumf %18, %20 : vector<80x128xf32>
    %22 = arith.truncf %21 : vector<80x128xf32> to vector<80x128xbf16>
    %cst_20 = arith.constant dense<0.000000e+00> : vector<80x128xf32>
    %23 = tpu.matmul %22, %4, %cst_20 {dimension_numbers = #tpu.dot_dimension_numbers<[1], [0], [0], [1], [0, 0, 1, 1], [], []>} : vector<80x128xbf16>, vector<128x128xbf16>, vector<80x128xf32> -> vector<80x128xf32>
    %24 = vector.broadcast %5 : vector<1x128xf32> to vector<80x128xf32>
    %25 = arith.addf %23, %24 : vector<80x128xf32>
    %cst_21 = arith.constant 2.000000e-01 : f32
    %26 = vector.broadcast %cst_21 : f32 to vector<80x128xf32>
    %27 = arith.mulf %26, %25 : vector<80x128xf32>
    %28 = arith.maximumf %25, %27 : vector<80x128xf32>
    %29 = arith.truncf %28 : vector<80x128xf32> to vector<80x128xbf16>
    %cst_22 = arith.constant dense<0.000000e+00> : vector<80x256xf32>
    %30 = tpu.matmul %29, %6, %cst_22 {dimension_numbers = #tpu.dot_dimension_numbers<[1], [0], [0], [1], [0, 0, 1, 1], [], []>} : vector<80x128xbf16>, vector<128x256xbf16>, vector<80x256xf32> -> vector<80x256xf32>
    %31 = vector.broadcast %7 : vector<1x256xf32> to vector<80x256xf32>
    %32 = arith.addf %30, %31 : vector<80x256xf32>
    %c0_23 = arith.constant 0 : index
    %c0_24 = arith.constant 0 : index
    %33 = vector.load %arg10[%c0_23, %c0_24] : memref<160x256xf32, #tpu.memory_space<vmem>>, vector<80x256xf32>
    tpu.vector_store %arg10[%c0_23, %c0_24], %32 {strides = array<i32>} : memref<160x256xf32, #tpu.memory_space<vmem>>, vector<80x256xf32>,
    %c80 = arith.constant 80 : index
    %c0_25 = arith.constant 0 : index
    %34 = vector.load %arg1[%c80, %c0_25] : memref<160x32xbf16, #tpu.memory_space<vmem>>, vector<80x32xbf16>
    %cst_26 = arith.constant dense<0.000000e+00> : vector<80x128xf32>
    %35 = tpu.matmul %34, %0, %cst_26 {dimension_numbers = #tpu.dot_dimension_numbers<[1], [0], [0], [1], [0, 0, 1, 1], [], []>} : vector<80x32xbf16>, vector<32x128xbf16>, vector<80x128xf32> -> vector<80x128xf32>
    %36 = vector.broadcast %1 : vector<1x128xf32> to vector<80x128xf32>
    %37 = arith.addf %35, %36 : vector<80x128xf32>
    %cst_27 = arith.constant 2.000000e-01 : f32
    %38 = vector.broadcast %cst_27 : f32 to vector<80x128xf32>
    %39 = arith.mulf %38, %37 : vector<80x128xf32>
    %40 = arith.maximumf %37, %39 : vector<80x128xf32>
    %41 = arith.truncf %40 : vector<80x128xf32> to vector<80x128xbf16>
    %cst_28 = arith.constant dense<0.000000e+00> : vector<80x128xf32>
    %42 = tpu.matmul %41, %2, %cst_28 {dimension_numbers = #tpu.dot_dimension_numbers<[1], [0], [0], [1], [0, 0, 1, 1], [], []>} : vector<80x128xbf16>, vector<128x128xbf16>, vector<80x128xf32> -> vector<80x128xf32>
    %43 = vector.broadcast %3 : vector<1x128xf32> to vector<80x128xf32>
    %44 = arith.addf %42, %43 : vector<80x128xf32>
    %cst_29 = arith.constant 2.000000e-01 : f32
    %45 = vector.broadcast %cst_29 : f32 to vector<80x128xf32>
    %46 = arith.mulf %45, %44 : vector<80x128xf32>
    %47 = arith.maximumf %44, %46 : vector<80x128xf32>
    %48 = arith.truncf %47 : vector<80x128xf32> to vector<80x128xbf16>
    %cst_30 = arith.constant dense<0.000000e+00> : vector<80x128xf32>
    %49 = tpu.matmul %48, %4, %cst_30 {dimension_numbers = #tpu.dot_dimension_numbers<[1], [0], [0], [1], [0, 0, 1, 1], [], []>} : vector<80x128xbf16>, vector<128x128xbf16>, vector<80x128xf32> -> vector<80x128xf32>
    %50 = vector.broadcast %5 : vector<1x128xf32> to vector<80x128xf32>
    %51 = arith.addf %49, %50 : vector<80x128xf32>
    %cst_31 = arith.constant 2.000000e-01 : f32
    %52 = vector.broadcast %cst_31 : f32 to vector<80x128xf32>
    %53 = arith.mulf %52, %51 : vector<80x128xf32>
    %54 = arith.maximumf %51, %53 : vector<80x128xf32>
    %55 = arith.truncf %54 : vector<80x128xf32> to vector<80x128xbf16>
    %cst_32 = arith.constant dense<0.000000e+00> : vector<80x256xf32>
    %56 = tpu.matmul %55, %6, %cst_32 {dimension_numbers = #tpu.dot_dimension_numbers<[1], [0], [0], [1], [0, 0, 1, 1], [], []>} : vector<80x128xbf16>, vector<128x256xbf16>, vector<80x256xf32> -> vector<80x256xf32>
    %57 = vector.broadcast %7 : vector<1x256xf32> to vector<80x256xf32>
    %58 = arith.addf %56, %57 : vector<80x256xf32>
    %c80_33 = arith.constant 80 : index
    %c0_34 = arith.constant 0 : index
    %59 = vector.load %arg10[%c80_33, %c0_34] : memref<160x256xf32, #tpu.memory_space<vmem>>, vector<80x256xf32>
    tpu.vector_store %arg10[%c80_33, %c0_34], %58 {strides = array<i32>} : memref<160x256xf32, #tpu.memory_space<vmem>>, vector<80x256xf32>,
    return
  }
  func.func @transform_0(%arg0: i32) -> (i32, i32) {
    %c0_i32 = arith.constant 0 : i32
    %c0_i32_0 = arith.constant 0 : i32
    return %arg0, %c0_i32 : i32, i32
  }
  func.func @transform_1(%arg0: i32) -> (i32, i32) {
    %c0_i32 = arith.constant 0 : i32
    %c0_i32_0 = arith.constant 0 : i32
    %c0_i32_1 = arith.constant 0 : i32
    return %c0_i32, %c0_i32_0 : i32, i32
  }
  func.func @transform_2(%arg0: i32) -> (i32, i32) {
    %c0_i32 = arith.constant 0 : i32
    %c0_i32_0 = arith.constant 0 : i32
    %c0_i32_1 = arith.constant 0 : i32
    return %c0_i32, %c0_i32_0 : i32, i32
  }
  func.func @transform_3(%arg0: i32) -> (i32, i32) {
    %c0_i32 = arith.constant 0 : i32
    %c0_i32_0 = arith.constant 0 : i32
    %c0_i32_1 = arith.constant 0 : i32
    return %c0_i32, %c0_i32_0 : i32, i32
  }
  func.func @transform_4(%arg0: i32) -> (i32, i32) {
    %c0_i32 = arith.constant 0 : i32
    %c0_i32_0 = arith.constant 0 : i32
    %c0_i32_1 = arith.constant 0 : i32
    return %c0_i32, %c0_i32_0 : i32, i32
  }
  func.func @transform_5(%arg0: i32) -> (i32, i32) {
    %c0_i32 = arith.constant 0 : i32
    %c0_i32_0 = arith.constant 0 : i32
    %c0_i32_1 = arith.constant 0 : i32
    return %c0_i32, %c0_i32_0 : i32, i32
  }
  func.func @transform_6(%arg0: i32) -> (i32, i32) {
    %c0_i32 = arith.constant 0 : i32
    %c0_i32_0 = arith.constant 0 : i32
    %c0_i32_1 = arith.constant 0 : i32
    return %c0_i32, %c0_i32_0 : i32, i32
  }
  func.func @transform_7(%arg0: i32) -> (i32, i32) {
    %c0_i32 = arith.constant 0 : i32
    %c0_i32_0 = arith.constant 0 : i32
    %c0_i32_1 = arith.constant 0 : i32
    return %c0_i32, %c0_i32_0 : i32, i32
  }
  func.func @transform_8(%arg0: i32) -> (i32, i32) {
    %c0_i32 = arith.constant 0 : i32
    %c0_i32_0 = arith.constant 0 : i32
    %c0_i32_1 = arith.constant 0 : i32
    return %c0_i32, %c0_i32_0 : i32, i32
  }
  func.func @transform_9(%arg0: i32) -> (i32, i32) {
    %c0_i32 = arith.constant 0 : i32
    %c0_i32_0 = arith.constant 0 : i32
    return %arg0, %c0_i32 : i32, i32
  }
}

</mosaic_0001>

<bundles_post_ra>
// kernel: tpu_custom_call.1
= control target key start
LH: loop header
LB: loop body
LE: loop exit
PB: predicated region body
PF: predicated region fallthrough
CT: control target
= control target key end

     0   :  { %14 = vsyncpa [#allocation3], 0  ;;  %s2933_s0 = inlined_call_operand.vmem [shape: bf16[300,32], index: 0, kind: input, shape index: {}]   ;;  %s2934_s1 = inlined_call_operand.vmem [shape: bf16[32,128], index: 1, kind: input, shape index: {}]   ;;  %s2935_s2 = inlined_call_operand.vmem [shape: f32[1,128], index: 2, kind: input, shape index: {}]   ;;  %s2936_s3 = inlined_call_operand.vmem [shape: bf16[128,128], index: 3, kind: input, shape index: {}]   ;;  %s2937_s4 = inlined_call_operand.vmem [shape: f32[1,128], index: 4, kind: input, shape index: {}]   ;;  %s2938_s5 = inlined_call_operand.hbm [shape: bf16[128,128], index: 5, kind: input, shape index: {}]   ;;  %s2939_s6 = inlined_call_operand.vmem [shape: f32[1,128], index: 6, kind: input, shape index: {}]   ;;  %s2940_s7 = inlined_call_operand.vmem [shape: bf16[128,256], index: 7, kind: input, shape index: {}]   ;;  %s2941_s8 = inlined_call_operand.vmem [shape: f32[1,256], index: 8, kind: input, shape index: {}]   ;;  %s2942_s9 = inlined_call_operand.hbm [shape: f32[300,256], index: 9, kind: output, shape index: {}]  }
   0x1   :  { %15 = vsyncpa [#allocation4], 0 }
   0x2   :  { %17 = vsyncpa [#allocation4 + $0x1], 0  ;;  %s2254_s30 = smov 0   ;;  %s2256_s10 = smov 0  }
   0x3   :  { %s2258_s11 = smov 0   ;;  %s2260_s12 = smov 0  }
   0x4 LB: > { %s2275_s13 = sadd.s32 4294967295, %s2193_s12   ;;  %s1639_s14 = sadd.s32 4294967294, %s2193_s12   ;;  %s2193_s12 = sphi %s2260_s12, %s2957_s12   ;;  %s2189_s11 = sphi %s2258_s11, %s2956_s11   ;;  %s2185_s10 = sphi %s2256_s10, %s2955_s10   ;;  %s2181_s30 = sphi %s2254_s30, %s2954_s30  }
   0x5   : > { %s2279_s15 = sadd.s32 1, %s2193_s12   ;;  %s224_s16 = sadd.s32 1, %s2189_s11 }
   0x6   : > { %s221_s17 = ssub.s32 %s2193_s12, %s2279_s15  ;;  %p234_p0 = scmp.ne.s32.totalorder %s2189_s11, %s2185_s10 }
   0x7   : > { %p222_p1 = scmp.eq.s32.totalorder %s221_s17, 0  ;;  %p235_p2 = scmp.eq.s32.totalorder %s2275_s13, 1 }
   0x8   : > { %p240_p3 = scmp.ne.s32.totalorder %s2185_s10, %s2181_s30  ;;  %p241_p4 = scmp.eq.s32.totalorder %s1639_s14, 1 }
   0x9   : > { %s2290_s18 = scalar_select %p222_p1, %s2189_s11, %s224_s16  }
   0xa   : > { %p2292_p5 = por %p235_p2, %p234_p0  ;;  %p2296_p6 = por %p241_p4, %p240_p3 }
   0xb   : > { %p1640_p7 = scmp.ge.s32.totalorder %s2193_s12, 1  ;;  %p248_p8 = scmp.lt.s32.totalorder %s2193_s12, 3 }
   0xc   : > { %s2945_s19 = scalar_select %p2292_p5, 1, 0 }
   0xd   : > { %s2946_s20 = scalar_select %p2296_p6, 1, 0 }
   0xe   : > { %p2943_p9 = scmp.eq.s32.totalorder %s2275_s13, 0  ;;  %p2303_p10 = pnand %p1640_p7, %p248_p8 }
   0xf   : > { %s2195_s22 = smov [#allocation2]   ;;  %s2099_s27 = scalar_lea.hbm %s2938_s5, 1024 }
  0x10   : > { %s2947_s21 = scalar_select %p2303_p10, 1, 0 }
  0x11   : > { %s272_s23 = sshll.u32 %s2195_s22, 4  ;;  %p1996_p11 = pneg %p2303_p10  ;;  %s273_s23 = int_to_ptr.vmem [resolvable:$true] %s272_s23 }
  0x12   : > { %p2100_p13 = scmp.ne.s32.totalorder %s2938_s5, %s2099_s27  ;;  %p2106_p3 = scmp.lt.u32.totalorder %s2099_s27, %s2938_s5 }
  0x13   : > { %p2311_p12 = pnand %p2943_p9, %p1996_p11 }
  0x15   : > { %p2101_p0 = pneg %p2311_p12 }
  0x17   : > { %p2102_p1 = pnand %p2101_p0, %p2100_p13 }
  0x19   : > { %p2103_p2 = pneg %p2102_p1 }
  0x1b   : > { %p2108_p4 = pnand %p2106_p3, %p2103_p2 }
  0x1d   : > { %2111 = shalt.err (!%p2108_p4)
}
  0x1e   : > { %s2112_s17 = scalar_lea.vmem %s273_s23, 1024  ;;  %p2120_p9 = scmp.lt.s32.totalorder %s273_s23, %s273_s23 }
  0x1f   : > { %p2113_p7 = scmp.ne.s32.totalorder %s273_s23, %s2112_s17  ;;  %p2121_p6 = scmp.lt.s32.totalorder %s2112_s17, %s2112_s17 }
  0x21   : > { %p2115_p8 = pnand %p2113_p7, %p2101_p0  ;;  %p2122_p5 = por %p2121_p6, %p2120_p9 }
  0x23   : > { %p2116_p11 = pneg %p2115_p8 }
  0x25   : > { %p2123_p10 = pnand %p2122_p5, %p2116_p11 }
  0x27   : > { %2126 = shalt.err (!%p2123_p10)
}
  0x28   : > { %s2196_s22 = smov 64   ;;  %s2197_s25 = smov 4  }
  0x29   : > { %1999 = dma.hbm_to_vmem [thread:$0]  (!%p2311_p12), %s2938_s5, 1024, %s273_s23, [#allocation3], %s2196_s22, %s2196_s22, %s2197_s25  }
  0x2a   : > { %p2949_p13 = scmp.ne.s32.totalorder %s2947_s21, 0 }
  0x2b   : > { %p2950_p1 = scmp.eq.s32.totalorder (!%p2949_p13), %s2275_s13, 0 }
  0x2c   : > { %314 = sbr.rel (%p2949_p13) target bundleno = 1680 (0x690), region = 56 }
  0x33   : > { %2172 = dma.done.wait (%p2950_p1), [#allocation3], 1024   ;;  %p2951_p0 = pmov %p2950_p1 }
  0x34   : > { %s2338_s27 = smul.u32 20, %s2275_s13  ;;  %v2198_v0 = vmov 0.0   ;;  %vm2199_vm0 = vmmov 0   ;;  %v2351_v1 = vld [vmem:[%s2934_s1] sm:$0xff]   ;;  %v2362_v2 = vld [vmem:[%s2934_s1 + $0x8] sm:$0xff]   ;;  %vm484_vm1 = vcmask 261120  }
  0x35   : > { %2174 = vsyncadd (%p2951_p0), [#allocation3], 4294966272  ;;  %1782 = vmatprep.subr.bf16.mxu0 %v2198_v0  ;;  %1786 = vmatprep.mubr.msk.bf16.mxu0 %vm2199_vm0, %v2198_v0  ;;  %v2370_v4 = vld [vmem:[%s2936_s3] sm:$0xff]   ;;  %v2377_v5 = vld [vmem:[%s2936_s3 + $0x8] sm:$0xff]   ;;  %s351_s24 = sand.u32 1, %s2185_s10   ;;  %p2952_p6 = scmp.ne.s32.totalorder %s2945_s19, 0 }
  0x36   : > { %p359_p5 = scmp.lt.s32.totalorder %s2338_s27, 37  ;;  %1806 = vmatprep.subr.bf16.mxu1 %v2198_v0  ;;  %1822 = vmatprep.mubr.msk.bf16.mxu1 %vm2199_vm0, %v2198_v0  ;;  %v2388_v7 = vld [vmem:[%s2936_s3 + $0x10] sm:$0xff]   ;;  %v2394_v8 = vld [vmem:[%s2936_s3 + $0x18] sm:$0xff]   ;;  %v2404_v9 = vld [vmem:[%s2936_s3 + $0x20] sm:$0xff]   ;;  %s2872_s22 = scalar_lea.sflag [#allocation4], %s351_s24 }
  0x37   : > { %1783 = vmatpush3.bf16.msra.mxu0 %v2351_v1  ;;  %1807 = vmatpush3.bf16.msra.mxu1 %v2370_v4  ;;  %v2425_v13 = vld [vmem:[%s2936_s3 + $0x28] sm:$0xff]   ;;  %v2432_v14 = vld [vmem:[%s2936_s3 + $0x30] sm:$0xff]   ;;  %v2439_v15 = vld [vmem:[%s2936_s3 + $0x38] sm:$0xff]   ;;  %s1552_s25 = ssub.s32 (%p2952_p6), 38, %s2338_s27 }
  0x38   : > { %s360_s21 = scalar_select %p359_p5, %s2338_s27, 37  ;;  %1784 = vmatprep.subr.bf16.mxu0 %v2198_v0  ;;  %1808 = vmatprep.subr.bf16.mxu1 %v2198_v0  ;;  %v2442_v16 = vld [vmem:[#allocation2] sm:$0xff]   ;;  %v2445_v17 = vld [vmem:[#allocation2 + $0x8] sm:$0xff]   ;;  %v2450_v18 = vld [vmem:[#allocation2 + $0x10] sm:$0xff]  }
  0x39   : > { %v2453_v19 = vld [vmem:[#allocation2 + $0x18] sm:$0xff]   ;;  %v2457_v20 = vld [vmem:[#allocation2 + $0x20] sm:$0xff]   ;;  %v2461_v21 = vld [vmem:[#allocation2 + $0x28] sm:$0xff]   ;;  %p1553_p9 = scmp.lt.s32.totalorder (%p2952_p6), %s1552_s25, 20 }
  0x3a   : > { %s1645_s23 = sshll.u32 %s360_s21, 2  ;;  %v2469_v22 = vld [vmem:[%s2935_s2] ss:$0 sm:$0xff] }
  0x3b   : > { %s2356_s17 = scalar_lea.vmem %s2933_s0, %s1645_s23  ;;  %1785 = vmatpush3.bf16.msra.mxu0 %v2362_v2  ;;  %1809 = vmatpush3.bf16.msra.mxu1 %v2377_v5 }
  0x3c   : > { %v2049_v3 = vld [vmem:[%s2356_s17] sm:$0xff]   ;;  %1842 = vmatprep.subr.bf16.mxu0 %v2198_v0  ;;  %v2050_v6 = vld [vmem:[%s2356_s17 + $0x8] sm:$0xff]   ;;  %1810 = vmatprep.subr.bf16.mxu1 %v2198_v0  ;;  %v2051_v10 = vld [vmem:[%s2356_s17 + $0x10] sm:$0xff]  }
  0x3d   : > { %v2052_v11 = vld [vmem:[%s2356_s17 + $0x18] sm:$0xff]   ;;  %v2055_v12 = vld [vmem:[%s2356_s17 + $0x20] sm:$0xff]  }
  0x3e   : > { %1787 = vmatmul.mubr.msk.bf16.vlgmr.msra.gmra.mrb[0].mxu0 %vm484_vm1, %v2049_v3 }
  0x3f   : > { %1790 = vmatprep.mubr.msk.bf16.mxu0 %vm2199_vm0, %v2198_v0  ;;  %1811 = vmatpush3.bf16.msra.mxu1 %v2388_v7 }
  0x40   : > { %1812 = vmatprep.subr.bf16.mxu1 %v2198_v0  ;;  %1843 = vmatpush3.bf16.msra.mxu0 %v2442_v16 }
  0x41   : > { %1844 = vmatprep.subr.bf16.mxu0 %v2198_v0 }
  0x43   : > { %1813 = vmatpush3.bf16.msra.mxu1 %v2394_v8 }
  0x44   : > { %1814 = vmatprep.subr.bf16.mxu1 %v2198_v0  ;;  %1845 = vmatpush3.bf16.msra.mxu0 %v2445_v17 }
  0x45   : > { %1846 = vmatprep.subr.bf16.mxu0 %v2198_v0 }
  0x46   : > { %1791 = vmatmul.mubr.msk.bf16.gmra.mrb[4].mxu0 %vm484_vm1, %v2050_v6 }
  0x47   : > { %1794 = vmatprep.mubr.msk.bf16.mxu0 %vm2199_vm0, %v2198_v0  ;;  %1815 = vmatpush3.bf16.msra.mxu1 %v2404_v9 }
  0x48   : > { %1816 = vmatprep.subr.bf16.mxu1 %v2198_v0  ;;  %1847 = vmatpush3.bf16.msra.mxu0 %v2450_v18 }
  0x49   : > { %1848 = vmatprep.subr.bf16.mxu0 %v2198_v0 }
  0x4b   : > { %1817 = vmatpush3.bf16.msra.mxu1 %v2425_v13 }
  0x4c   : > { %1818 = vmatprep.subr.bf16.mxu1 %v2198_v0  ;;  %1849 = vmatpush3.bf16.msra.mxu0 %v2453_v19 }
  0x4d   : > { %1850 = vmatprep.subr.bf16.mxu0 %v2198_v0 }
  0x4e   : > { %1795 = vmatmul.mubr.msk.bf16.gmra.mrb[8].mxu0 %vm484_vm1, %v2051_v10 }
  0x4f   : > { %1798 = vmatprep.mubr.msk.bf16.mxu0 %vm2199_vm0, %v2198_v0  ;;  %1819 = vmatpush3.bf16.msra.mxu1 %v2432_v14 }
  0x50   : > { %1820 = vmatprep.subr.bf16.mxu1 %v2198_v0  ;;  %1851 = vmatpush3.bf16.msra.mxu0 %v2457_v20 }
  0x51   : > { %1852 = vmatprep.subr.bf16.mxu0 %v2198_v0 }
  0x53   : > { %1821 = vmatpush3.bf16.msra.mxu1 %v2439_v15 }
  0x54   : > { %1853 = vmatpush3.bf16.msra.mxu0 %v2461_v21 }
  0x55   : > { %1854 = vmatprep.subr.bf16.mxu0 %v2198_v0 }
  0x56   : > { %1799 = vmatmul.mubr.msk.bf16.gmra.mrb[12].mxu0 %vm484_vm1, %v2052_v11 }
  0x57   : > { %1802 = vmatprep.mubr.msk.bf16.mxu0 %vm2199_vm0, %v2198_v0 }
  0x5e   : > { %1803 = vmatmul.mubr.msk.bf16.gmra.mrb[16].mxu0 %vm484_vm1, %v2055_v12 }
  0x5f   : > { %1858 = vmatprep.mubr.msk.bf16.mxu0 %vm2199_vm0, %v2198_v0 }
 0x111   : > { %v534_v23 = vpop.f32.mrb[0].mxu0 }
 0x112   : > { %v535_v24 = vadd.f32 %v2469_v22, %v534_v23  ;;  %v1788_v25 = vpop.f32.mrb[1].mxu0 }
 0x113   : > { %v537_v26 = vpop.f32.mrb[2].mxu0 }
 0x114   : > { %v573_v27 = vmul.f32 0.2, %v535_v24  ;;  %v538_v28 = vadd.f32 %v2469_v22, %v537_v26  ;;  %v1789_v29 = vpop.f32.mrb[3].mxu0 }
 0x116   : > { %v574_v30 = vmul.f32 0.2, %v538_v28  ;;  %v583_v31 = vmax.f32 %v535_v24, %v573_v27 }
 0x118   : > { %v584_v32 = vmax.f32 %v538_v28, %v574_v30 }
 0x119   : > { %v542_v33 = vpop.f32.mrb[4].mxu0 }
 0x11a   : > { %v593_v34 = vpack.c.bf16 %v584_v32, %v583_v31  ;;  %v543_v35 = vadd.f32 %v2469_v22, %v542_v33  ;;  %v1792_v36 = vpop.f32.mrb[5].mxu0  ;;  %v2489_v32 = vld [vmem:[#allocation2 + $0x30] sm:$0xff]   ;;  %v2493_v33 = vld [vmem:[#allocation2 + $0x38] sm:$0xff]  }
 0x11b   : > { %v545_v37 = vpop.f32.mrb[6].mxu0  ;;  %1855 = vmatpush3.bf16.msra.mxu0 %v2489_v32  ;;  %v2510_v36 = vld [vmem:[%s2940_s7 + $0x14] ss:$8 sps:$4 sm:$0xff]  }
 0x11c   : > { %1823 = vmatmul.mubr.bf16.vlgmr.msra.gmra.mrb[0].mxu1 %v593_v34  ;;  %v575_v38 = vmul.f32 0.2, %v543_v35  ;;  %v546_v39 = vadd.f32 %v2469_v22, %v545_v37  ;;  %v1793_v40 = vpop.f32.mrb[7].mxu0  ;;  %1856 = vmatprep.subr.bf16.mxu0 %v2198_v0  ;;  %v2499_v34 = vld [vmem:[%s2940_s7 + $0x4] ss:$8 sps:$4 sm:$0xff]  }
 0x11d   : > { %1826 = vmatprep.mubr.msk.bf16.mxu1 %vm2199_vm0, %v2198_v0  ;;  %1974 = vmatprep.subr.bf16.mxu1 %v2499_v34  ;;  %v2518_v37 = vld [vmem:[%s2940_s7 + $0x10] ss:$8 sps:$4 sm:$0xff]   ;;  %v2534_v40 = vld [vmem:[%s2940_s7 + $0x34] ss:$8 sps:$4 sm:$0xff]  }
 0x11e   : > { %v585_v41 = vmax.f32 %v543_v35, %v575_v38  ;;  %v576_v42 = vmul.f32 0.2, %v546_v39  ;;  %v2504_v35 = vld [vmem:[%s2940_s7] ss:$8 sps:$4 sm:$0xff]   ;;  %v2524_v38 = vld [vmem:[%s2940_s7 + $0x24] ss:$8 sps:$4 sm:$0xff]  }
 0x11f   : > { %1857 = vmatpush3.bf16.msra.mxu0 %v2493_v33  ;;  %1982 = vmatpush1.bf16.msra.mxu1 %v2504_v35 }
 0x120   : > { %v586_v43 = vmax.f32 %v546_v39, %v576_v42  ;;  %993 = vmatprep.subr.bf16.mxu0 %v2499_v34  ;;  %1975 = vmatprep.subr.bf16.mxu1 %v2510_v36  ;;  %v2529_v39 = vld [vmem:[%s2940_s7 + $0x20] ss:$8 sps:$4 sm:$0xff]   ;;  %v2547_v42 = vld [vmem:[%s2940_s7 + $0x44] ss:$8 sps:$4 sm:$0xff]  }
 0x121   : > { %v550_v44 = vpop.f32.mrb[8].mxu0 }
 0x122   : > { %v551_v45 = vadd.f32 %v2469_v22, %v550_v44  ;;  %v1796_v46 = vpop.f32.mrb[9].mxu0  ;;  %v594_v47 = vpack.c.bf16 %v586_v43, %v585_v41  ;;  %v2542_v41 = vld [vmem:[%s2940_s7 + $0x30] ss:$8 sps:$4 sm:$0xff]   ;;  %v2554_v43 = vld [vmem:[%s2940_s7 + $0x40] ss:$8 sps:$4 sm:$0xff]  }
 0x123   : > { %v553_v48 = vpop.f32.mrb[10].mxu0  ;;  %1983 = vmatpush1.bf16.msra.mxu1 %v2518_v37  ;;  %v2559_v44 = vld [vmem:[%s2940_s7 + $0x54] ss:$8 sps:$4 sm:$0xff]   ;;  %v2572_v46 = vld [vmem:[%s2937_s4] ss:$0 sm:$0xff] }
 0x124   : > { %v577_v49 = vmul.f32 0.2, %v551_v45  ;;  %v554_v50 = vadd.f32 %v2469_v22, %v553_v48  ;;  %1827 = vmatmul.mubr.bf16.gmra.mrb[4].mxu1 %v594_v47  ;;  %v1797_v51 = vpop.f32.mrb[11].mxu0  ;;  %1976 = vmatprep.subr.bf16.mxu1 %v2524_v38 }
 0x125   : > { %1830 = vmatprep.mubr.msk.bf16.mxu1 %vm2199_vm0, %v2198_v0 }
 0x126   : > { %v587_v52 = vmax.f32 %v551_v45, %v577_v49  ;;  %v578_v53 = vmul.f32 0.2, %v554_v50  ;;  %v2566_v45 = vld [vmem:[%s2940_s7 + $0x50] ss:$8 sps:$4 sm:$0xff]  }
 0x127   : > { %1984 = vmatpush1.bf16.msra.mxu1 %v2529_v39 }
 0x128   : > { %v588_v54 = vmax.f32 %v554_v50, %v578_v53  ;;  %1977 = vmatprep.subr.bf16.mxu1 %v2534_v40 }
 0x129   : > { %v558_v55 = vpop.f32.mrb[12].mxu0 }
 0x12a   : > { %v559_v56 = vadd.f32 %v2469_v22, %v558_v55  ;;  %v1800_v57 = vpop.f32.mrb[13].mxu0  ;;  %v595_v58 = vpack.c.bf16 %v588_v54, %v587_v52 }
 0x12b   : > { %v561_v59 = vpop.f32.mrb[14].mxu0  ;;  %1985 = vmatpush1.bf16.msra.mxu1 %v2542_v41 }
 0x12c   : > { %v579_v60 = vmul.f32 0.2, %v559_v56  ;;  %v562_v61 = vadd.f32 %v2469_v22, %v561_v59  ;;  %1831 = vmatmul.mubr.bf16.gmra.mrb[8].mxu1 %v595_v58  ;;  %v1801_v62 = vpop.f32.mrb[15].mxu0  ;;  %1978 = vmatprep.subr.bf16.mxu1 %v2547_v42 }
 0x12d   : > { %1834 = vmatprep.mubr.msk.bf16.mxu1 %vm2199_vm0, %v2198_v0 }
 0x12e   : > { %v589_v63 = vmax.f32 %v559_v56, %v579_v60  ;;  %v580_v3 = vmul.f32 0.2, %v562_v61 }
 0x12f   : > { %1986 = vmatpush1.bf16.msra.mxu1 %v2554_v43 }
 0x130   : > { %v590_v6 = vmax.f32 %v562_v61, %v580_v3  ;;  %1979 = vmatprep.subr.bf16.mxu1 %v2559_v44 }
 0x131   : > { %v566_v10 = vpop.f32.mrb[16].mxu0 }
 0x132   : > { %v567_v11 = vadd.f32 %v2469_v22, %v566_v10  ;;  %v1804_v12 = vpop.f32.mrb[17].mxu0  ;;  %v596_v23 = vpack.c.bf16 %v590_v6, %v589_v63 }
 0x133   : > { %v569_v24 = vpop.f32.mrb[18].mxu0  ;;  %1987 = vmatpush1.bf16.msra.mxu1 %v2566_v45 }
 0x134   : > { %v581_v25 = vmul.f32 0.2, %v567_v11  ;;  %v570_v26 = vadd.f32 %v2469_v22, %v569_v24  ;;  %1835 = vmatmul.mubr.bf16.gmra.mrb[12].mxu1 %v596_v23  ;;  %v1805_v27 = vpop.f32.mrb[19].mxu0 }
 0x135   : > { %1838 = vmatprep.mubr.msk.bf16.mxu1 %vm2199_vm0, %v2198_v0 }
 0x136   : > { %v591_v28 = vmax.f32 %v567_v11, %v581_v25  ;;  %v582_v29 = vmul.f32 0.2, %v570_v26 }
 0x138   : > { %v592_v30 = vmax.f32 %v570_v26, %v582_v29 }
 0x13a   : > { %v597_v31 = vpack.c.bf16 %v592_v30, %v591_v28 }
 0x13c   : > { %1839 = vmatmul.mubr.bf16.gmra.mrb[16].mxu1 %v597_v31 }
 0x1ef   : > { %v686_v47 = vpop.f32.mrb[0].mxu1 }
 0x1f0   : > { %v687_v48 = vadd.f32 %v2572_v46, %v686_v47  ;;  %v1824_v49 = vpop.f32.mrb[1].mxu1 }
 0x1f1   : > { %v689_v50 = vpop.f32.mrb[2].mxu1 }
 0x1f2   : > { %v725_v51 = vmul.f32 0.2, %v687_v48  ;;  %v690_v52 = vadd.f32 %v2572_v46, %v689_v50  ;;  %v1825_v53 = vpop.f32.mrb[3].mxu1 }
 0x1f4   : > { %v726_v54 = vmul.f32 0.2, %v690_v52  ;;  %v735_v55 = vmax.f32 %v687_v48, %v725_v51 }
 0x1f6   : > { %v736_v56 = vmax.f32 %v690_v52, %v726_v54 }
 0x1f7   : > { %v694_v57 = vpop.f32.mrb[4].mxu1 }
 0x1f8   : > { %v745_v58 = vpack.c.bf16 %v736_v56, %v735_v55  ;;  %v695_v59 = vadd.f32 %v2572_v46, %v694_v57  ;;  %v1828_v60 = vpop.f32.mrb[5].mxu1 }
 0x1f9   : > { %v697_v61 = vpop.f32.mrb[6].mxu1 }
 0x1fa   : > { %1859 = vmatmul.mubr.bf16.vlgmr.msra.gmra.mrb[20].mxu0 %v745_v58  ;;  %v727_v62 = vmul.f32 0.2, %v695_v59  ;;  %v698_v63 = vadd.f32 %v2572_v46, %v697_v61  ;;  %v1829_v3 = vpop.f32.mrb[7].mxu1 }
 0x1fb   : > { %1862 = vmatprep.mubr.msk.bf16.mxu0 %vm2199_vm0, %v2198_v0  ;;  %994 = vmatpush1.bf16.msra.mxu0 %v2504_v35 }
 0x1fc   : > { %v737_v6 = vmax.f32 %v695_v59, %v727_v62  ;;  %v728_v10 = vmul.f32 0.2, %v698_v63  ;;  %995 = vmatprep.subr.bf16.mxu0 %v2510_v36 }
 0x1fe   : > { %v738_v11 = vmax.f32 %v698_v63, %v728_v10 }
 0x1ff   : > { %v702_v12 = vpop.f32.mrb[8].mxu1  ;;  %996 = vmatpush1.bf16.msra.mxu0 %v2518_v37 }
 0x200   : > { %v703_v23 = vadd.f32 %v2572_v46, %v702_v12  ;;  %v1832_v24 = vpop.f32.mrb[9].mxu1  ;;  %v746_v25 = vpack.c.bf16 %v738_v11, %v737_v6  ;;  %997 = vmatprep.subr.bf16.mxu0 %v2524_v38 }
 0x201   : > { %v705_v26 = vpop.f32.mrb[10].mxu1 }
 0x202   : > { %v729_v27 = vmul.f32 0.2, %v703_v23  ;;  %v706_v28 = vadd.f32 %v2572_v46, %v705_v26  ;;  %1863 = vmatmul.mubr.bf16.gmra.mrb[24].mxu0 %v746_v25  ;;  %v1833_v29 = vpop.f32.mrb[11].mxu1  ;;  %v2606_v25 = vld [vmem:[%s2940_s7 + $0x64] ss:$8 sps:$4 sm:$0xff]  }
 0x203   : > { %1866 = vmatprep.mubr.msk.bf16.mxu0 %vm2199_vm0, %v2198_v0  ;;  %998 = vmatpush1.bf16.msra.mxu0 %v2529_v39  ;;  %v2611_v26 = vld [vmem:[%s2940_s7 + $0x60] ss:$8 sps:$4 sm:$0xff]   ;;  %v2200_v29 = vmov 0  }
 0x204   : > { %v739_v30 = vmax.f32 %v703_v23, %v729_v27  ;;  %v730_v31 = vmul.f32 0.2, %v706_v28  ;;  %999 = vmatprep.subr.bf16.mxu0 %v2534_v40  ;;  %1980 = vmatprep.subr.bf16.mxu1 %v2606_v25  ;;  %v2620_v27 = vld [vmem:[%s2940_s7 + $0x74] ss:$8 sps:$4 sm:$0xff]  }
 0x205   : > { %1988 = vmatpush1.bf16.msra.mxu1 %v2611_v26  ;;  %1035 = vmatprep.mubr.bf16.mxu1 %v2200_v29 }
 0x206   : > { %v740_v47 = vmax.f32 %v706_v28, %v730_v31  ;;  %v2625_v28 = vld [vmem:[%s2940_s7 + $0x70] ss:$8 sps:$4 sm:$0xff]   ;;  %1981 = vmatprep.subr.bf16.mxu1 %v2620_v27 }
 0x207   : > { %v710_v48 = vpop.f32.mrb[12].mxu1  ;;  %1000 = vmatpush1.bf16.msra.mxu0 %v2542_v41 }
 0x208   : > { %v711_v49 = vadd.f32 %v2572_v46, %v710_v48  ;;  %v1836_v50 = vpop.f32.mrb[13].mxu1  ;;  %v747_v51 = vpack.c.bf16 %v740_v47, %v739_v30  ;;  %1001 = vmatprep.subr.bf16.mxu0 %v2547_v42  ;;  %v2638_v30 = vld [vmem:[%s2939_s6] ss:$0 sm:$0xff] }
 0x209   : > { %v713_v52 = vpop.f32.mrb[14].mxu1  ;;  %1989 = vmatpush1.bf16.msra.mxu1 %v2625_v28 }
 0x20a   : > { %v731_v53 = vmul.f32 0.2, %v711_v49  ;;  %v714_v54 = vadd.f32 %v2572_v46, %v713_v52  ;;  %1867 = vmatmul.mubr.bf16.gmra.mrb[28].mxu0 %v747_v51  ;;  %v1837_v55 = vpop.f32.mrb[15].mxu1  ;;  %1902 = vmatprep.subr.bf16.mxu1 %v2198_v0 }
 0x20b   : > { %1870 = vmatprep.mubr.msk.bf16.mxu0 %vm2199_vm0, %v2198_v0  ;;  %1002 = vmatpush1.bf16.msra.mxu0 %v2554_v43 }
 0x20c   : > { %v741_v56 = vmax.f32 %v711_v49, %v731_v53  ;;  %v732_v57 = vmul.f32 0.2, %v714_v54  ;;  %1003 = vmatprep.subr.bf16.mxu0 %v2559_v44 }
 0x20e   : > { %v742_v58 = vmax.f32 %v714_v54, %v732_v57 }
 0x20f   : > { %v718_v59 = vpop.f32.mrb[16].mxu1  ;;  %1004 = vmatpush1.bf16.msra.mxu0 %v2566_v45 }
 0x210   : > { %v719_v60 = vadd.f32 %v2572_v46, %v718_v59  ;;  %v1840_v61 = vpop.f32.mrb[17].mxu1  ;;  %v748_v62 = vpack.c.bf16 %v742_v58, %v741_v56  ;;  %1005 = vmatprep.subr.bf16.mxu0 %v2606_v25 }
 0x211   : > { %v721_v63 = vpop.f32.mrb[18].mxu1 }
 0x212   : > { %v733_v3 = vmul.f32 0.2, %v719_v60  ;;  %v722_v6 = vadd.f32 %v2572_v46, %v721_v63  ;;  %1871 = vmatmul.mubr.bf16.gmra.mrb[32].mxu0 %v748_v62  ;;  %v1841_v10 = vpop.f32.mrb[19].mxu1 }
 0x213   : > { %1874 = vmatprep.mubr.msk.bf16.mxu0 %vm2199_vm0, %v2198_v0  ;;  %1006 = vmatpush1.bf16.msra.mxu0 %v2611_v26  ;;  %v2094_v10 = vld [vmem:[%s2356_s17 + $0x28] sm:$0xff]  }
 0x214   : > { %v743_v11 = vmax.f32 %v719_v60, %v733_v3  ;;  %v734_v12 = vmul.f32 0.2, %v722_v6  ;;  %1007 = vmatprep.subr.bf16.mxu0 %v2620_v27 }
 0x216   : > { %v744_v23 = vmax.f32 %v722_v6, %v734_v12 }
 0x217   : > { %1008 = vmatpush1.bf16.msra.mxu0 %v2625_v28 }
 0x218   : > { %v749_v24 = vpack.c.bf16 %v744_v23, %v743_v11  ;;  %1878 = vmatprep.subr.bf16.mxu0 %v2198_v0 }
 0x21a   : > { %1875 = vmatmul.mubr.bf16.gmra.mrb[36].mxu0 %v749_v24 }
 0x21b   : > { %1025 = vmatprep.mubr.bf16.mxu0 %v2200_v29 }
 0x2cd   : > { %v838_v31 = vpop.f32.mrb[20].mxu0 }
 0x2ce   : > { %v839_v47 = vadd.f32 %v2638_v30, %v838_v31  ;;  %v1860_v48 = vpop.f32.mrb[21].mxu0 }
 0x2cf   : > { %v841_v49 = vpop.f32.mrb[22].mxu0 }
 0x2d0   : > { %v877_v50 = vmul.f32 0.2, %v839_v47  ;;  %v842_v51 = vadd.f32 %v2638_v30, %v841_v49  ;;  %v1861_v52 = vpop.f32.mrb[23].mxu0 }
 0x2d2   : > { %v878_v53 = vmul.f32 0.2, %v842_v51  ;;  %v887_v54 = vmax.f32 %v839_v47, %v877_v50 }
 0x2d4   : > { %v888_v55 = vmax.f32 %v842_v51, %v878_v53  ;;  %v2095_v51 = vld [vmem:[%s2356_s17 + $0x30] sm:$0xff]  }
 0x2d5   : > { %v846_v56 = vpop.f32.mrb[24].mxu0 }
 0x2d6   : > { %v897_v57 = vpack.c.bf16 %v888_v55, %v887_v54  ;;  %v847_v58 = vadd.f32 %v2638_v30, %v846_v56  ;;  %v1864_v59 = vpop.f32.mrb[25].mxu0 }
 0x2d7   : > { %v849_v60 = vpop.f32.mrb[26].mxu0  ;;  %v2096_v59 = vld [vmem:[%s2356_s17 + $0x38] sm:$0xff]  }
 0x2d8   : > { %1026 = vmatmul.mubr.bf16.vlgmr.msra.gmra.mrb[40].mxu0 %v897_v57  ;;  %v879_v61 = vmul.f32 0.2, %v847_v58  ;;  %v850_v62 = vadd.f32 %v2638_v30, %v849_v60  ;;  %v1865_v63 = vpop.f32.mrb[27].mxu0 }
 0x2d9   : > { %1879 = vmatpush3.bf16.msra.mxu0 %v2351_v1  ;;  %1882 = vmatprep.mubr.msk.bf16.mxu0 %vm2199_vm0, %v2198_v0 }
 0x2da   : > { %1880 = vmatprep.subr.bf16.mxu0 %v2198_v0  ;;  %v889_v3 = vmax.f32 %v847_v58, %v879_v61  ;;  %v880_v6 = vmul.f32 0.2, %v850_v62 }
 0x2dc   : > { %v890_v11 = vmax.f32 %v850_v62, %v880_v6 }
 0x2dd   : > { %1881 = vmatpush3.bf16.msra.mxu0 %v2362_v2  ;;  %v854_v12 = vpop.f32.mrb[28].mxu0 }
 0x2de   : > { %v898_v23 = vpack.c.bf16 %v890_v11, %v889_v3  ;;  %v855_v24 = vadd.f32 %v2638_v30, %v854_v12  ;;  %v1868_v31 = vpop.f32.mrb[29].mxu0  ;;  %1938 = vmatprep.subr.bf16.mxu0 %v2198_v0  ;;  %v2097_v11 = vld [vmem:[%s2356_s17 + $0x40] sm:$0xff]  }
 0x2df   : > { %v857_v1 = vpop.f32.mrb[30].mxu0 }
 0x2e0   : > { %1883 = vmatmul.mubr.msk.bf16.vlgmr.msra.gmra.mrb[44].mxu0 %vm484_vm1, %v2094_v10  ;;  %v881_v47 = vmul.f32 0.2, %v855_v24  ;;  %v858_v48 = vadd.f32 %v2638_v30, %v857_v1  ;;  %1036 = vmatmul.mubr.bf16.vlgmr.msra.gmra.mrb[20].mxu1 %v898_v23  ;;  %v1869_v49 = vpop.f32.mrb[31].mxu0 }
 0x2e1   : > { %1886 = vmatprep.mubr.msk.bf16.mxu0 %vm2199_vm0, %v2198_v0  ;;  %1045 = vmatprep.mubr.bf16.mxu1 %v2200_v29 }
 0x2e2   : > { %v891_v2 = vmax.f32 %v855_v24, %v881_v47  ;;  %v882_v50 = vmul.f32 0.2, %v858_v48  ;;  %1903 = vmatpush3.bf16.msra.mxu1 %v2370_v4  ;;  %1939 = vmatpush3.bf16.msra.mxu0 %v2442_v16 }
 0x2e3   : > { %1904 = vmatprep.subr.bf16.mxu1 %v2198_v0  ;;  %1940 = vmatprep.subr.bf16.mxu0 %v2198_v0 }
 0x2e4   : > { %v892_v52 = vmax.f32 %v858_v48, %v882_v50 }
 0x2e5   : > { %v862_v53 = vpop.f32.mrb[32].mxu0 }
 0x2e6   : > { %v863_v54 = vadd.f32 %v2638_v30, %v862_v53  ;;  %v1872_v55 = vpop.f32.mrb[33].mxu0  ;;  %v899_v56 = vpack.c.bf16 %v892_v52, %v891_v2  ;;  %1905 = vmatpush3.bf16.msra.mxu1 %v2377_v5  ;;  %1941 = vmatpush3.bf16.msra.mxu0 %v2445_v17 }
 0x2e7   : > { %v865_v57 = vpop.f32.mrb[34].mxu0  ;;  %1906 = vmatprep.subr.bf16.mxu1 %v2198_v0  ;;  %1942 = vmatprep.subr.bf16.mxu0 %v2198_v0 }
 0x2e8   : > { %1887 = vmatmul.mubr.msk.bf16.gmra.mrb[48].mxu0 %vm484_vm1, %v2095_v51  ;;  %v883_v4 = vmul.f32 0.2, %v863_v54  ;;  %v866_v16 = vadd.f32 %v2638_v30, %v865_v57  ;;  %1046 = vmatmul.mubr.bf16.gmra.mrb[24].mxu1 %v899_v56  ;;  %v1873_v58 = vpop.f32.mrb[35].mxu0 }
 0x2e9   : > { %1890 = vmatprep.mubr.msk.bf16.mxu0 %vm2199_vm0, %v2198_v0  ;;  %1055 = vmatprep.mubr.bf16.mxu1 %v2200_v29 }
 0x2ea   : > { %v893_v5 = vmax.f32 %v863_v54, %v883_v4  ;;  %v884_v17 = vmul.f32 0.2, %v866_v16  ;;  %1907 = vmatpush3.bf16.msra.mxu1 %v2388_v7  ;;  %1943 = vmatpush3.bf16.msra.mxu0 %v2450_v18 }
 0x2eb   : > { %1908 = vmatprep.subr.bf16.mxu1 %v2198_v0  ;;  %1944 = vmatprep.subr.bf16.mxu0 %v2198_v0 }
 0x2ec   : > { %v894_v60 = vmax.f32 %v866_v16, %v884_v17 }
 0x2ed   : > { %v870_v61 = vpop.f32.mrb[36].mxu0 }
 0x2ee   : > { %v871_v62 = vadd.f32 %v2638_v30, %v870_v61  ;;  %v1876_v63 = vpop.f32.mrb[37].mxu0  ;;  %v900_v3 = vpack.c.bf16 %v894_v60, %v893_v5  ;;  %1909 = vmatpush3.bf16.msra.mxu1 %v2394_v8  ;;  %1945 = vmatpush3.bf16.msra.mxu0 %v2453_v19 }
 0x2ef   : > { %v873_v6 = vpop.f32.mrb[38].mxu0  ;;  %1910 = vmatprep.subr.bf16.mxu1 %v2198_v0  ;;  %1946 = vmatprep.subr.bf16.mxu0 %v2198_v0 }
 0x2f0   : > { %1891 = vmatmul.mubr.msk.bf16.gmra.mrb[52].mxu0 %vm484_vm1, %v2096_v59  ;;  %v885_v7 = vmul.f32 0.2, %v871_v62  ;;  %v874_v18 = vadd.f32 %v2638_v30, %v873_v6  ;;  %1056 = vmatmul.mubr.bf16.gmra.mrb[28].mxu1 %v900_v3  ;;  %v1877_v10 = vpop.f32.mrb[39].mxu0 }
 0x2f1   : > { %1894 = vmatprep.mubr.msk.bf16.mxu0 %vm2199_vm0, %v2198_v0  ;;  %1065 = vmatprep.mubr.bf16.mxu1 %v2200_v29 }
 0x2f2   : > { %v895_v8 = vmax.f32 %v871_v62, %v885_v7  ;;  %v886_v19 = vmul.f32 0.2, %v874_v18  ;;  %1911 = vmatpush3.bf16.msra.mxu1 %v2404_v9  ;;  %1947 = vmatpush3.bf16.msra.mxu0 %v2457_v20  ;;  %v2098_v9 = vld [vmem:[%s2356_s17 + $0x48] sm:$0xff]   ;;  %s1990_s17 = smul.u32 320, %s351_s24 }
 0x2f3   : > { %1912 = vmatprep.subr.bf16.mxu1 %v2198_v0  ;;  %1948 = vmatprep.subr.bf16.mxu0 %v2198_v0 }
 0x2f4   : > { %v896_v12 = vmax.f32 %v874_v18, %v886_v19  ;;  %s2724_s16 = scalar_lea.vmem [#allocation5], %s1990_s17 }
 0x2f6   : > { %v901_v23 = vpack.c.bf16 %v896_v12, %v895_v8  ;;  %1913 = vmatpush3.bf16.msra.mxu1 %v2425_v13  ;;  %1949 = vmatpush3.bf16.msra.mxu0 %v2461_v21  ;;  %v903_v13 = vlaneseq  ;;  %v430_v21 = vld [vmem:[%s2941_s8] sm:$0x3] }
 0x2f7   : > { %1914 = vmatprep.subr.bf16.mxu1 %v2198_v0  ;;  %1950 = vmatprep.subr.bf16.mxu0 %v2198_v0 }
 0x2f8   : > { %1895 = vmatmul.mubr.msk.bf16.gmra.mrb[56].mxu0 %vm484_vm1, %v2097_v11  ;;  %1066 = vmatmul.mubr.bf16.gmra.mrb[32].mxu1 %v901_v23 }
 0x2f9   : > { %1898 = vmatprep.mubr.msk.bf16.mxu0 %vm2199_vm0, %v2198_v0  ;;  %1918 = vmatprep.mubr.msk.bf16.mxu1 %vm2199_vm0, %v2198_v0 }
 0x2fa   : > { %1915 = vmatpush3.bf16.msra.mxu1 %v2432_v14  ;;  %1951 = vmatpush3.bf16.msra.mxu0 %v2489_v32  ;;  %v904_v14 = vshrl.u32 %v903_v13, 7 }
 0x2fb   : > { %1916 = vmatprep.subr.bf16.mxu1 %v2198_v0  ;;  %1952 = vmatprep.subr.bf16.mxu0 %v2198_v0 }
 0x2fc   : > { %v905_v20 = vsub.s32 0, %v904_v14  ;;  %v909_v32 = vsub.s32 1, %v904_v14 }
 0x2fe   : > { %1917 = vmatpush3.bf16.msra.mxu1 %v2439_v15  ;;  %1953 = vmatpush3.bf16.msra.mxu0 %v2493_v33  ;;  %v2718_v15 = vrot.slane %v430_v21, %v905_v20  ;;  %v2720_v33 = vrot.slane %v430_v21, %v909_v32 }
 0x2ff   : > { %1440 = vmatprep.subr.bf16.mxu1 %v2499_v34 }
 0x300   : > { %1899 = vmatmul.mubr.msk.bf16.gmra.mrb[60].mxu0 %vm484_vm1, %v2098_v9 }
 0x301   : > { %1954 = vmatprep.mubr.msk.bf16.mxu0 %vm2199_vm0, %v2198_v0 }
 0x3ab   : > { %v1027_v34 = vpop.f32.mrb[40].mxu0 }
 0x3ac   : > { %v1028_v24 = vadd.f32 %v1027_v34, %v2718_v15  ;;  %v1029_v31 = vpop.f32.mrb[41].mxu0 }
 0x3ad   : > { %v1030_v1 = vadd.f32 %v1029_v31, %v2720_v33  ;;  %v1031_v47 = vpop.f32.mrb[42].mxu0 }
 0x3ae   : > { %1076 = vst [vmem:[%s2724_s16] sm:$0xff] %v1028_v24  ;;  %v1032_v48 = vadd.f32 %v1031_v47, %v2718_v15  ;;  %v1033_v49 = vpop.f32.mrb[43].mxu0 }
 0x3af   : > { %1077 = vst [vmem:[%s2724_s16 + $0x8] sm:$0xff] %v1030_v1  ;;  %v1034_v2 = vadd.f32 %v1033_v49, %v2720_v33 }
 0x3b0   : > { %1078 = vst [vmem:[%s2724_s16 + $0x10] sm:$0xff] %v1032_v48 }
 0x3b1   : > { %1079 = vst [vmem:[%s2724_s16 + $0x18] sm:$0xff] %v1034_v2 }
 0x3b3   : > { %v1180_v50 = vpop.f32.mrb[44].mxu0  ;;  %v1037_v51 = vpop.f32.mrb[20].mxu1 }
 0x3b4   : > { %v1181_v52 = vadd.f32 %v2469_v22, %v1180_v50  ;;  %v1884_v53 = vpop.f32.mrb[45].mxu0  ;;  %v1038_v54 = vadd.f32 %v1037_v51, %v2718_v15  ;;  %v1039_v55 = vpop.f32.mrb[21].mxu1 }
 0x3b5   : > { %v1183_v56 = vpop.f32.mrb[46].mxu0  ;;  %v1040_v57 = vadd.f32 %v1039_v55, %v2720_v33  ;;  %v1041_v4 = vpop.f32.mrb[22].mxu1 }
 0x3b6   : > { %v1219_v16 = vmul.f32 0.2, %v1181_v52  ;;  %v1184_v58 = vadd.f32 %v2469_v22, %v1183_v56  ;;  %v1885_v5 = vpop.f32.mrb[47].mxu0  ;;  %1080 = vst [vmem:[%s2724_s16 + $0x20] sm:$0xff] %v1038_v54  ;;  %v1042_v17 = vadd.f32 %v1041_v4, %v2718_v15  ;;  %v1043_v59 = vpop.f32.mrb[23].mxu1 }
 0x3b7   : > { %1081 = vst [vmem:[%s2724_s16 + $0x28] sm:$0xff] %v1040_v57  ;;  %v1044_v60 = vadd.f32 %v1043_v59, %v2720_v33 }
 0x3b8   : > { %v1220_v61 = vmul.f32 0.2, %v1184_v58  ;;  %1082 = vst [vmem:[%s2724_s16 + $0x30] sm:$0xff] %v1042_v17  ;;  %v1229_v62 = vmax.f32 %v1181_v52, %v1219_v16 }
 0x3b9   : > { %1083 = vst [vmem:[%s2724_s16 + $0x38] sm:$0xff] %v1044_v60 }
 0x3ba   : > { %v1230_v63 = vmax.f32 %v1184_v58, %v1220_v61 }
 0x3bb   : > { %v1188_v3 = vpop.f32.mrb[48].mxu0  ;;  %v1047_v6 = vpop.f32.mrb[24].mxu1 }
 0x3bc   : > { %v1239_v7 = vpack.c.bf16 %v1230_v63, %v1229_v62  ;;  %v1189_v18 = vadd.f32 %v2469_v22, %v1188_v3  ;;  %v1888_v10 = vpop.f32.mrb[49].mxu0  ;;  %v1048_v8 = vadd.f32 %v1047_v6, %v2718_v15  ;;  %v1049_v19 = vpop.f32.mrb[25].mxu1 }
 0x3bd   : > { %v1191_v11 = vpop.f32.mrb[50].mxu0  ;;  %v1050_v12 = vadd.f32 %v1049_v19, %v2720_v33  ;;  %v1051_v23 = vpop.f32.mrb[26].mxu1 }
 0x3be   : > { %v1221_v9 = vmul.f32 0.2, %v1189_v18  ;;  %v1192_v13 = vadd.f32 %v2469_v22, %v1191_v11  ;;  %v1889_v14 = vpop.f32.mrb[51].mxu0  ;;  %1919 = vmatmul.mubr.bf16.vlgmr.msra.gmra.mrb[36].mxu1 %v1239_v7  ;;  %1084 = vst [vmem:[%s2724_s16 + $0x40] sm:$0xff] %v1048_v8  ;;  %v1052_v20 = vadd.f32 %v1051_v23, %v2718_v15  ;;  %v1053_v21 = vpop.f32.mrb[27].mxu1 }
 0x3bf   : > { %1922 = vmatprep.mubr.msk.bf16.mxu1 %vm2199_vm0, %v2198_v0  ;;  %1085 = vst [vmem:[%s2724_s16 + $0x48] sm:$0xff] %v1050_v12  ;;  %v1054_v32 = vadd.f32 %v1053_v21, %v2720_v33  ;;  %1441 = vmatpush1.bf16.msra.mxu1 %v2504_v35 }
 0x3c0   : > { %v1222_v34 = vmul.f32 0.2, %v1192_v13  ;;  %1086 = vst [vmem:[%s2724_s16 + $0x50] sm:$0xff] %v1052_v20  ;;  %1442 = vmatprep.subr.bf16.mxu1 %v2510_v36  ;;  %v1231_v24 = vmax.f32 %v1189_v18, %v1221_v9 }
 0x3c1   : > { %1087 = vst [vmem:[%s2724_s16 + $0x58] sm:$0xff] %v1054_v32 }
 0x3c2   : > { %v1232_v31 = vmax.f32 %v1192_v13, %v1222_v34 }
 0x3c3   : > { %v1196_v1 = vpop.f32.mrb[52].mxu0  ;;  %v1057_v47 = vpop.f32.mrb[28].mxu1  ;;  %1443 = vmatpush1.bf16.msra.mxu1 %v2518_v37 }
 0x3c4   : > { %v1197_v48 = vadd.f32 %v2469_v22, %v1196_v1  ;;  %v1892_v49 = vpop.f32.mrb[53].mxu0  ;;  %v1240_v2 = vpack.c.bf16 %v1232_v31, %v1231_v24  ;;  %v1058_v50 = vadd.f32 %v1057_v47, %v2718_v15  ;;  %v1059_v35 = vpop.f32.mrb[29].mxu1  ;;  %1444 = vmatprep.subr.bf16.mxu1 %v2524_v38 }
 0x3c5   : > { %v1199_v36 = vpop.f32.mrb[54].mxu0  ;;  %v1060_v51 = vadd.f32 %v1059_v35, %v2720_v33  ;;  %v1061_v52 = vpop.f32.mrb[30].mxu1 }
 0x3c6   : > { %v1223_v53 = vmul.f32 0.2, %v1197_v48  ;;  %v1200_v54 = vadd.f32 %v2469_v22, %v1199_v36  ;;  %v1893_v37 = vpop.f32.mrb[55].mxu0  ;;  %1923 = vmatmul.mubr.bf16.gmra.mrb[40].mxu1 %v1240_v2  ;;  %1088 = vst [vmem:[%s2724_s16 + $0x60] sm:$0xff] %v1058_v50  ;;  %v1062_v55 = vadd.f32 %v1061_v52, %v2718_v15  ;;  %v1063_v56 = vpop.f32.mrb[31].mxu1 }
 0x3c7   : > { %1926 = vmatprep.mubr.msk.bf16.mxu1 %vm2199_vm0, %v2198_v0  ;;  %1089 = vst [vmem:[%s2724_s16 + $0x68] sm:$0xff] %v1060_v51  ;;  %v1064_v38 = vadd.f32 %v1063_v56, %v2720_v33  ;;  %1445 = vmatpush1.bf16.msra.mxu1 %v2529_v39 }
 0x3c8   : > { %v1224_v57 = vmul.f32 0.2, %v1200_v54  ;;  %1090 = vst [vmem:[%s2724_s16 + $0x70] sm:$0xff] %v1062_v55  ;;  %1446 = vmatprep.subr.bf16.mxu1 %v2534_v40  ;;  %v1233_v4 = vmax.f32 %v1197_v48, %v1223_v53 }
 0x3c9   : > { %1091 = vst [vmem:[%s2724_s16 + $0x78] sm:$0xff] %v1064_v38 }
 0x3ca   : > { %v1234_v16 = vmax.f32 %v1200_v54, %v1224_v57 }
 0x3cb   : > { %v1204_v58 = vpop.f32.mrb[56].mxu0  ;;  %v1067_v5 = vpop.f32.mrb[32].mxu1  ;;  %1447 = vmatpush1.bf16.msra.mxu1 %v2542_v41 }
 0x3cc   : > { %v1205_v17 = vadd.f32 %v2469_v22, %v1204_v58  ;;  %v1896_v59 = vpop.f32.mrb[57].mxu0  ;;  %v1241_v60 = vpack.c.bf16 %v1234_v16, %v1233_v4  ;;  %v1068_v61 = vadd.f32 %v1067_v5, %v2718_v15  ;;  %v1069_v39 = vpop.f32.mrb[33].mxu1  ;;  %1448 = vmatprep.subr.bf16.mxu1 %v2547_v42 }
 0x3cd   : > { %v1207_v40 = vpop.f32.mrb[58].mxu0  ;;  %v1070_v62 = vadd.f32 %v1069_v39, %v2720_v33  ;;  %v1071_v63 = vpop.f32.mrb[34].mxu1 }
 0x3ce   : > { %v1225_v3 = vmul.f32 0.2, %v1205_v17  ;;  %v1208_v6 = vadd.f32 %v2469_v22, %v1207_v40  ;;  %v1897_v41 = vpop.f32.mrb[59].mxu0  ;;  %1927 = vmatmul.mubr.bf16.gmra.mrb[44].mxu1 %v1241_v60  ;;  %1092 = vst [vmem:[%s2724_s16 + $0x80] sm:$0xff] %v1068_v61  ;;  %v1072_v7 = vadd.f32 %v1071_v63, %v2718_v15  ;;  %v1073_v18 = vpop.f32.mrb[35].mxu1 }
 0x3cf   : > { %1930 = vmatprep.mubr.msk.bf16.mxu1 %vm2199_vm0, %v2198_v0  ;;  %1093 = vst [vmem:[%s2724_s16 + $0x88] sm:$0xff] %v1070_v62  ;;  %v1074_v42 = vadd.f32 %v1073_v18, %v2720_v33  ;;  %1449 = vmatpush1.bf16.msra.mxu1 %v2554_v43 }
 0x3d0   : > { %v1226_v10 = vmul.f32 0.2, %v1208_v6  ;;  %1094 = vst [vmem:[%s2724_s16 + $0x90] sm:$0xff] %v1072_v7  ;;  %1450 = vmatprep.subr.bf16.mxu1 %v2559_v44  ;;  %v1235_v8 = vmax.f32 %v1205_v17, %v1225_v3 }
 0x3d1   : > { %1095 = vst [vmem:[%s2724_s16 + $0x98] sm:$0xff] %v1074_v42 }
 0x3d2   : > { %v1236_v19 = vmax.f32 %v1208_v6, %v1226_v10 }
 0x3d3   : > { %v1212_v11 = vpop.f32.mrb[60].mxu0  ;;  %1451 = vmatpush1.bf16.msra.mxu1 %v2566_v45 }
 0x3d4   : > { %v1213_v12 = vadd.f32 %v2469_v22, %v1212_v11  ;;  %v1900_v23 = vpop.f32.mrb[61].mxu0  ;;  %v1242_v9 = vpack.c.bf16 %v1236_v19, %v1235_v8  ;;  %1452 = vmatprep.subr.bf16.mxu1 %v2606_v25 }
 0x3d5   : > { %v1215_v13 = vpop.f32.mrb[62].mxu0 }
 0x3d6   : > { %v1227_v14 = vmul.f32 0.2, %v1213_v12  ;;  %v1216_v43 = vadd.f32 %v2469_v22, %v1215_v13  ;;  %v1901_v20 = vpop.f32.mrb[63].mxu0  ;;  %1931 = vmatmul.mubr.bf16.gmra.mrb[48].mxu1 %v1242_v9 }
 0x3d7   : > { %1934 = vmatprep.mubr.msk.bf16.mxu1 %vm2199_vm0, %v2198_v0  ;;  %1453 = vmatpush1.bf16.msra.mxu1 %v2611_v26 }
 0x3d8   : > { %v1228_v44 = vmul.f32 0.2, %v1216_v43  ;;  %1454 = vmatprep.subr.bf16.mxu1 %v2620_v27  ;;  %v1237_v45 = vmax.f32 %v1213_v12, %v1227_v14 }
 0x3da   : > { %v1238_v21 = vmax.f32 %v1216_v43, %v1228_v44 }
 0x3db   : > { %1455 = vmatpush1.bf16.msra.mxu1 %v2625_v28 }
 0x3dc   : > { %v1243_v32 = vpack.c.bf16 %v1238_v21, %v1237_v45 }
 0x3de   : > { %1935 = vmatmul.mubr.bf16.gmra.mrb[52].mxu1 %v1243_v32 }
 0x3df   : > { %1472 = vmatprep.mubr.bf16.mxu1 %v2200_v29 }
 0x491   : > { %v1278_v25 = vpop.f32.mrb[36].mxu1 }
 0x492   : > { %v1279_v22 = vadd.f32 %v2572_v46, %v1278_v25  ;;  %v1920_v34 = vpop.f32.mrb[37].mxu1 }
 0x493   : > { %v1281_v24 = vpop.f32.mrb[38].mxu1 }
 0x494   : > { %v1317_v31 = vmul.f32 0.2, %v1279_v22  ;;  %v1282_v1 = vadd.f32 %v2572_v46, %v1281_v24  ;;  %v1921_v26 = vpop.f32.mrb[39].mxu1 }
 0x496   : > { %v1318_v47 = vmul.f32 0.2, %v1282_v1  ;;  %v1327_v48 = vmax.f32 %v1279_v22, %v1317_v31 }
 0x498   : > { %v1328_v27 = vmax.f32 %v1282_v1, %v1318_v47 }
 0x499   : > { %v1286_v49 = vpop.f32.mrb[40].mxu1 }
 0x49a   : > { %v1337_v2 = vpack.c.bf16 %v1328_v27, %v1327_v48  ;;  %v1287_v28 = vadd.f32 %v2572_v46, %v1286_v49  ;;  %v1924_v50 = vpop.f32.mrb[41].mxu1 }
 0x49b   : > { %v1289_v35 = vpop.f32.mrb[42].mxu1 }
 0x49c   : > { %v1319_v36 = vmul.f32 0.2, %v1287_v28  ;;  %v1290_v51 = vadd.f32 %v2572_v46, %v1289_v35  ;;  %v1925_v52 = vpop.f32.mrb[43].mxu1  ;;  %1955 = vmatmul.mubr.bf16.vlgmr.msra.gmra.mrb[64].mxu0 %v1337_v2 }
 0x49d   : > { %1958 = vmatprep.mubr.msk.bf16.mxu0 %vm2199_vm0, %v2198_v0 }
 0x49e   : > { %v1320_v53 = vmul.f32 0.2, %v1290_v51  ;;  %v1329_v54 = vmax.f32 %v1287_v28, %v1319_v36 }
 0x4a0   : > { %v1330_v37 = vmax.f32 %v1290_v51, %v1320_v53 }
 0x4a1   : > { %v1294_v55 = vpop.f32.mrb[44].mxu1 }
 0x4a2   : > { %v1295_v56 = vadd.f32 %v2572_v46, %v1294_v55  ;;  %v1928_v38 = vpop.f32.mrb[45].mxu1  ;;  %v1338_v57 = vpack.c.bf16 %v1330_v37, %v1329_v54 }
 0x4a3   : > { %v1297_v4 = vpop.f32.mrb[46].mxu1 }
 0x4a4   : > { %v1321_v16 = vmul.f32 0.2, %v1295_v56  ;;  %v1298_v58 = vadd.f32 %v2572_v46, %v1297_v4  ;;  %v1929_v5 = vpop.f32.mrb[47].mxu1  ;;  %1959 = vmatmul.mubr.bf16.gmra.mrb[68].mxu0 %v1338_v57 }
 0x4a5   : > { %1962 = vmatprep.mubr.msk.bf16.mxu0 %vm2199_vm0, %v2198_v0 }
 0x4a6   : > { %v1322_v17 = vmul.f32 0.2, %v1298_v58  ;;  %v1331_v59 = vmax.f32 %v1295_v56, %v1321_v16 }
 0x4a8   : > { %v1332_v60 = vmax.f32 %v1298_v58, %v1322_v17 }
 0x4a9   : > { %v1302_v61 = vpop.f32.mrb[48].mxu1 }
 0x4aa   : > { %v1303_v39 = vadd.f32 %v2572_v46, %v1302_v61  ;;  %v1932_v40 = vpop.f32.mrb[49].mxu1  ;;  %v1339_v62 = vpack.c.bf16 %v1332_v60, %v1331_v59 }
 0x4ab   : > { %v1305_v63 = vpop.f32.mrb[50].mxu1 }
 0x4ac   : > { %v1323_v3 = vmul.f32 0.2, %v1303_v39  ;;  %v1306_v6 = vadd.f32 %v2572_v46, %v1305_v63  ;;  %v1933_v41 = vpop.f32.mrb[51].mxu1  ;;  %1963 = vmatmul.mubr.bf16.gmra.mrb[72].mxu0 %v1339_v62 }
 0x4ad   : > { %1966 = vmatprep.mubr.msk.bf16.mxu0 %vm2199_vm0, %v2198_v0 }
 0x4ae   : > { %v1324_v7 = vmul.f32 0.2, %v1306_v6  ;;  %v1333_v18 = vmax.f32 %v1303_v39, %v1323_v3 }
 0x4b0   : > { %v1334_v42 = vmax.f32 %v1306_v6, %v1324_v7 }
 0x4b1   : > { %v1310_v10 = vpop.f32.mrb[52].mxu1 }
 0x4b2   : > { %v1311_v8 = vadd.f32 %v2572_v46, %v1310_v10  ;;  %v1936_v19 = vpop.f32.mrb[53].mxu1  ;;  %v1340_v11 = vpack.c.bf16 %v1334_v42, %v1333_v18 }
 0x4b3   : > { %v1313_v12 = vpop.f32.mrb[54].mxu1 }
 0x4b4   : > { %v1325_v23 = vmul.f32 0.2, %v1311_v8  ;;  %v1314_v9 = vadd.f32 %v2572_v46, %v1313_v12  ;;  %v1937_v13 = vpop.f32.mrb[55].mxu1  ;;  %1967 = vmatmul.mubr.bf16.gmra.mrb[76].mxu0 %v1340_v11 }
 0x4b5   : > { %1970 = vmatprep.mubr.msk.bf16.mxu0 %vm2199_vm0, %v2198_v0 }
 0x4b6   : > { %v1326_v14 = vmul.f32 0.2, %v1314_v9  ;;  %v1335_v43 = vmax.f32 %v1311_v8, %v1325_v23 }
 0x4b8   : > { %v1336_v20 = vmax.f32 %v1314_v9, %v1326_v14 }
 0x4ba   : > { %v1341_v44 = vpack.c.bf16 %v1336_v20, %v1335_v43 }
 0x4bc   : > { %1971 = vmatmul.mubr.bf16.gmra.mrb[80].mxu0 %v1341_v44 }
 0x56f   : > { %v1376_v45 = vpop.f32.mrb[64].mxu0 }
 0x570   : > { %v1377_v21 = vadd.f32 %v2638_v30, %v1376_v45  ;;  %v1956_v32 = vpop.f32.mrb[65].mxu0 }
 0x571   : > { %v1379_v25 = vpop.f32.mrb[66].mxu0 }
 0x572   : > { %v1415_v22 = vmul.f32 0.2, %v1377_v21  ;;  %v1380_v34 = vadd.f32 %v2638_v30, %v1379_v25  ;;  %v1957_v24 = vpop.f32.mrb[67].mxu0 }
 0x574   : > { %v1416_v46 = vmul.f32 0.2, %v1380_v34  ;;  %v1425_v31 = vmax.f32 %v1377_v21, %v1415_v22 }
 0x576   : > { %v1426_v1 = vmax.f32 %v1380_v34, %v1416_v46 }
 0x577   : > { %v1384_v26 = vpop.f32.mrb[68].mxu0 }
 0x578   : > { %v1435_v47 = vpack.c.bf16 %v1426_v1, %v1425_v31  ;;  %v1385_v0 = vadd.f32 %v2638_v30, %v1384_v26  ;;  %v1960_v48 = vpop.f32.mrb[69].mxu0 }
 0x579   : > { %v1387_v27 = vpop.f32.mrb[70].mxu0 }
 0x57a   : > { %v1417_v49 = vmul.f32 0.2, %v1385_v0  ;;  %v1388_v2 = vadd.f32 %v2638_v30, %v1387_v27  ;;  %v1961_v28 = vpop.f32.mrb[71].mxu0  ;;  %1473 = vmatmul.mubr.bf16.vlgmr.msra.gmra.mrb[56].mxu1 %v1435_v47 }
 0x57b   : > { %1482 = vmatprep.mubr.bf16.mxu1 %v2200_v29 }
 0x57c   : > { %v1418_v50 = vmul.f32 0.2, %v1388_v2  ;;  %v1427_v35 = vmax.f32 %v1385_v0, %v1417_v49 }
 0x57e   : > { %v1428_v36 = vmax.f32 %v1388_v2, %v1418_v50 }
 0x57f   : > { %v1392_v51 = vpop.f32.mrb[72].mxu0 }
 0x580   : > { %v1393_v52 = vadd.f32 %v2638_v30, %v1392_v51  ;;  %v1964_v53 = vpop.f32.mrb[73].mxu0  ;;  %v1436_v54 = vpack.c.bf16 %v1428_v36, %v1427_v35 }
 0x581   : > { %v1395_v37 = vpop.f32.mrb[74].mxu0 }
 0x582   : > { %v1419_v55 = vmul.f32 0.2, %v1393_v52  ;;  %v1396_v56 = vadd.f32 %v2638_v30, %v1395_v37  ;;  %v1965_v38 = vpop.f32.mrb[75].mxu0  ;;  %1483 = vmatmul.mubr.bf16.gmra.mrb[60].mxu1 %v1436_v54 }
 0x583   : > { %1492 = vmatprep.mubr.bf16.mxu1 %v2200_v29 }
 0x584   : > { %v1420_v57 = vmul.f32 0.2, %v1396_v56  ;;  %v1429_v4 = vmax.f32 %v1393_v52, %v1419_v55 }
 0x586   : > { %v1430_v16 = vmax.f32 %v1396_v56, %v1420_v57 }
 0x587   : > { %v1400_v58 = vpop.f32.mrb[76].mxu0 }
 0x588   : > { %v1401_v5 = vadd.f32 %v2638_v30, %v1400_v58  ;;  %v1968_v17 = vpop.f32.mrb[77].mxu0  ;;  %v1437_v59 = vpack.c.bf16 %v1430_v16, %v1429_v4 }
 0x589   : > { %v1403_v60 = vpop.f32.mrb[78].mxu0 }
 0x58a   : > { %v1421_v61 = vmul.f32 0.2, %v1401_v5  ;;  %v1404_v39 = vadd.f32 %v2638_v30, %v1403_v60  ;;  %v1969_v40 = vpop.f32.mrb[79].mxu0  ;;  %1493 = vmatmul.mubr.bf16.gmra.mrb[64].mxu1 %v1437_v59 }
 0x58b   : > { %1502 = vmatprep.mubr.bf16.mxu1 %v2200_v29 }
 0x58c   : > { %v1422_v62 = vmul.f32 0.2, %v1404_v39  ;;  %v1431_v63 = vmax.f32 %v1401_v5, %v1421_v61 }
 0x58e   : > { %v1432_v3 = vmax.f32 %v1404_v39, %v1422_v62 }
 0x58f   : > { %v1408_v6 = vpop.f32.mrb[80].mxu0 }
 0x590   : > { %v1409_v41 = vadd.f32 %v2638_v30, %v1408_v6  ;;  %v1972_v7 = vpop.f32.mrb[81].mxu0  ;;  %v1438_v18 = vpack.c.bf16 %v1432_v3, %v1431_v63 }
 0x591   : > { %v1411_v42 = vpop.f32.mrb[82].mxu0 }
 0x592   : > { %v1423_v10 = vmul.f32 0.2, %v1409_v41  ;;  %v1412_v8 = vadd.f32 %v2638_v30, %v1411_v42  ;;  %v1973_v19 = vpop.f32.mrb[83].mxu0  ;;  %1503 = vmatmul.mubr.bf16.gmra.mrb[68].mxu1 %v1438_v18 }
 0x593   : > { %1512 = vmatprep.mubr.bf16.mxu1 %v2200_v29 }
 0x594   : > { %v1424_v11 = vmul.f32 0.2, %v1412_v8  ;;  %v1433_v12 = vmax.f32 %v1409_v41, %v1423_v10 }
 0x596   : > { %v1434_v23 = vmax.f32 %v1412_v8, %v1424_v11 }
 0x598   : > { %v1439_v9 = vpack.c.bf16 %v1434_v23, %v1433_v12 }
 0x59a   : > { %1513 = vmatmul.mubr.bf16.gmra.mrb[72].mxu1 %v1439_v9 }
 0x64d   : > { %v1474_v13 = vpop.f32.mrb[56].mxu1 }
 0x64e   : > { %v1475_v14 = vadd.f32 %v1474_v13, %v2718_v15  ;;  %v1476_v43 = vpop.f32.mrb[57].mxu1 }
 0x64f   : > { %v1477_v20 = vadd.f32 %v1476_v43, %v2720_v33  ;;  %v1478_v30 = vpop.f32.mrb[58].mxu1 }
 0x650   : > { %1523 = vst [vmem:[%s2724_s16 + $0xa0] sm:$0xff] %v1475_v14  ;;  %v1479_v44 = vadd.f32 %v1478_v30, %v2718_v15  ;;  %v1480_v29 = vpop.f32.mrb[59].mxu1 }
 0x651   : > { %1524 = vst [vmem:[%s2724_s16 + $0xa8] sm:$0xff] %v1477_v20  ;;  %v1481_v45 = vadd.f32 %v1480_v29, %v2720_v33 }
 0x652   : > { %1525 = vst [vmem:[%s2724_s16 + $0xb0] sm:$0xff] %v1479_v44 }
 0x653   : > { %1526 = vst [vmem:[%s2724_s16 + $0xb8] sm:$0xff] %v1481_v45 }
 0x655   : > { %v1484_v21 = vpop.f32.mrb[60].mxu1 }
 0x656   : > { %v1485_v32 = vadd.f32 %v1484_v21, %v2718_v15  ;;  %v1486_v25 = vpop.f32.mrb[61].mxu1 }
 0x657   : > { %v1487_v22 = vadd.f32 %v1486_v25, %v2720_v33  ;;  %v1488_v34 = vpop.f32.mrb[62].mxu1 }
 0x658   : > { %1527 = vst [vmem:[%s2724_s16 + $0xc0] sm:$0xff] %v1485_v32  ;;  %v1489_v24 = vadd.f32 %v1488_v34, %v2718_v15  ;;  %v1490_v46 = vpop.f32.mrb[63].mxu1 }
 0x659   : > { %1528 = vst [vmem:[%s2724_s16 + $0xc8] sm:$0xff] %v1487_v22  ;;  %v1491_v31 = vadd.f32 %v1490_v46, %v2720_v33 }
 0x65a   : > { %1529 = vst [vmem:[%s2724_s16 + $0xd0] sm:$0xff] %v1489_v24 }
 0x65b   : > { %1530 = vst [vmem:[%s2724_s16 + $0xd8] sm:$0xff] %v1491_v31 }
 0x65d   : > { %v1494_v1 = vpop.f32.mrb[64].mxu1 }
 0x65e   : > { %v1495_v26 = vadd.f32 %v1494_v1, %v2718_v15  ;;  %v1496_v47 = vpop.f32.mrb[65].mxu1 }
 0x65f   : > { %v1497_v0 = vadd.f32 %v1496_v47, %v2720_v33  ;;  %v1498_v48 = vpop.f32.mrb[66].mxu1 }
 0x660   : > { %1531 = vst [vmem:[%s2724_s16 + $0xe0] sm:$0xff] %v1495_v26  ;;  %v1499_v27 = vadd.f32 %v1498_v48, %v2718_v15  ;;  %v1500_v49 = vpop.f32.mrb[67].mxu1 }
 0x661   : > { %1532 = vst [vmem:[%s2724_s16 + $0xe8] sm:$0xff] %v1497_v0  ;;  %v1501_v2 = vadd.f32 %v1500_v49, %v2720_v33 }
 0x662   : > { %1533 = vst [vmem:[%s2724_s16 + $0xf0] sm:$0xff] %v1499_v27 }
 0x663   : > { %1534 = vst [vmem:[%s2724_s16 + $0xf8] sm:$0xff] %v1501_v2 }
 0x665   : > { %v1504_v28 = vpop.f32.mrb[68].mxu1 }
 0x666   : > { %v1505_v50 = vadd.f32 %v1504_v28, %v2718_v15  ;;  %v1506_v35 = vpop.f32.mrb[69].mxu1 }
 0x667   : > { %v1507_v36 = vadd.f32 %v1506_v35, %v2720_v33  ;;  %v1508_v51 = vpop.f32.mrb[70].mxu1 }
 0x668   : > { %1535 = vst [vmem:[%s2724_s16 + $0x100] sm:$0xff] %v1505_v50  ;;  %v1509_v52 = vadd.f32 %v1508_v51, %v2718_v15  ;;  %v1510_v53 = vpop.f32.mrb[71].mxu1 }
 0x669   : > { %1536 = vst [vmem:[%s2724_s16 + $0x108] sm:$0xff] %v1507_v36  ;;  %v1511_v54 = vadd.f32 %v1510_v53, %v2720_v33 }
 0x66a   : > { %1537 = vst [vmem:[%s2724_s16 + $0x110] sm:$0xff] %v1509_v52 }
 0x66b   : > { %1538 = vst [vmem:[%s2724_s16 + $0x118] sm:$0xff] %v1511_v54 }
 0x66d   : > { %v1514_v37 = vpop.f32.mrb[72].mxu1  ;;  %1550 = sbr.rel (!%p2952_p6) target bundleno = 1680 (0x690), region = 64 }
 0x66e   : > { %v1515_v55 = vadd.f32 %v1514_v37, %v2718_v15  ;;  %v1516_v56 = vpop.f32.mrb[73].mxu1 }
 0x66f   : > { %v1517_v38 = vadd.f32 %v1516_v56, %v2720_v33  ;;  %v1518_v57 = vpop.f32.mrb[74].mxu1 }
 0x670   : > { %1539 = vst [vmem:[%s2724_s16 + $0x120] sm:$0xff] %v1515_v55  ;;  %v1519_v4 = vadd.f32 %v1518_v57, %v2718_v15  ;;  %v1520_v16 = vpop.f32.mrb[75].mxu1 }
 0x671   : > { %1540 = vst [vmem:[%s2724_s16 + $0x128] sm:$0xff] %v1517_v38  ;;  %v1521_v58 = vadd.f32 %v1520_v16, %v2720_v33 }
 0x672   : > { %1541 = vst [vmem:[%s2724_s16 + $0x130] sm:$0xff] %v1519_v4 }
 0x673   : > { %1542 = vst [vmem:[%s2724_s16 + $0x138] sm:$0xff] %v1521_v58 }
 0x674   : > { %s2959_s25 = smov (!%p1553_p9, %s1552_s25), 20 }
 0x675   : > { %s2877_s26 = sshll.u32 %s2959_s25, 8 }
 0x676   : > { %s1558_s28 = ssub.s32 5120, %s2877_s26 }
 0x677   : > { %1559 = vsyncadd %s2872_s22, %s1558_s28  ;;  %p1705_p10 = scmp.ne.s32.totalorder %s2877_s26, 0  ;;  %s1715_s21 = smul.u32 5120, %s2275_s13 }
 0x678   : > { %s1565_s23 = sshll.u32 %s2724_s16, 4  ;;  %s2201_s14 = smov [#allocation5]   ;;  %s2889_s23 = int_to_ptr.vmem [resolvable:$true] %s1565_s23 }
 0x679   : > { %s2887_s29 = scalar_lea.hbm %s2942_s9, %s1715_s21  ;;  %s2127_s27 = scalar_lea.vmem %s2889_s23, %s2877_s26 }
 0x67a   : > { %p2128_p12 = scmp.ne.s32.totalorder %s2889_s23, %s2127_s27  ;;  %s2131_s17 = sshll.u32 %s2201_s14, 4  ;;  %s2132_s17 = int_to_ptr.vmem [resolvable:$false] %s2131_s17 }
 0x67b   : > { %s2133_s13 = scalar_lea.vmem %s2132_s17, 10240  ;;  %p2134_p4 = scmp.lt.s32.totalorder %s2889_s23, %s2132_s17 }
 0x67c   : > { %p2129_p2 = pnand %p2128_p12, %p1705_p10  ;;  %p2135_p7 = scmp.lt.s32.totalorder %s2133_s13, %s2127_s27 }
 0x67e   : > { %p2130_p3 = pneg %p2129_p2  ;;  %p2136_p8 = por %p2135_p7, %p2134_p4 }
 0x680   : > { %p2137_p11 = pnand %p2136_p8, %p2130_p3 }
 0x682   : > { %2140 = shalt.err (!%p2137_p11)
}
 0x683   : > { %s2141_s16 = scalar_lea.hbm %s2887_s29, %s2877_s26  ;;  %s2145_s21 = scalar_lea.hbm %s2942_s9, 9728 }
 0x684   : > { %p2142_p13 = scmp.ne.s32.totalorder %s2887_s29, %s2141_s16  ;;  %p2146_p5 = scmp.lt.u32.totalorder %s2887_s29, %s2942_s9 }
 0x685   : > { %p2147_p6 = scmp.lt.u32.totalorder %s2145_s21, %s2141_s16  ;;  %p2149_p12 = scmp.lt.u32.totalorder %s2141_s16, %s2887_s29 }
 0x686   : > { %p2143_p1 = pnand %p2142_p13, %p1705_p10 }
 0x687   : > { %p2148_p9 = por %p2147_p6, %p2146_p5 }
 0x688   : > { %p2144_p0 = pneg %p2143_p1 }
 0x689   : > { %p2150_p2 = por %p2149_p12, %p2148_p9 }
 0x68b   : > { %p2151_p3 = pnand %p2150_p2, %p2144_p0 }
 0x68d   : > { %2154 = shalt.err (!%p2151_p3)
}
 0x68e   : > { %s2202_s27 = smov 256   ;;  %s2203_s14 = smov 16  }
 0x68f   : > { %1571 = dma.vmem_to_hbm [thread:$0]  (%p1705_p10), %s2889_s23, %s2877_s26, %s2887_s29, %s2872_s22, %s2202_s27, %s2202_s27, %s2203_s14  }
 0x690 PF: > { %p2006_p4 = scmp.ge.s32.totalorder %s2193_s12, 2  ;;  %s1580_s17 = sand.u32 1, %s2181_s30  }
 0x691   : > { %p2953_p7 = scmp.ne.s32.totalorder %s2946_s20, 0  ;;  %s1581_s13 = scalar_lea.sflag [#allocation4], %s1580_s17 }
 0x693   : > { %p2001_p8 = pnand %p2006_p4, %p2953_p7 }
 0x695   : > { %2176 = dma.done.wait (!%p2001_p8), %s1581_s13, 5120  }
 0x696   : > { %2178 = vsyncadd (!%p2001_p8), %s1581_s13, 4294962176  ;;  %p20_p11 = scmp.ge.s32.totalorder %s2279_s15, 4   ;;  %s2954_s30 = smov %s2185_s10 }
 0x697   : > { %s2955_s10 = smov %s2189_s11  ;;  %s2956_s11 = smov %s2290_s18 }
 0x698   : > { %s2957_s12 = smov %s2279_s15  ;;  %22 = sbr.rel (!%p20_p11) target bundleno = 4 (0x4), region = 96 }
 0x69f   :  { %1586 = vsyncpa [#allocation3], 1 }
 0x6a0   :  { %1588 = vsyncpa [#allocation3 + $0x1], 1 }
 0x6a1   :  { %1589 = vsyncpa [#allocation4], 1 }
 0x6a2   :  { %1591 = vsyncpa [#allocation4 + $0x1], 1 }

</bundles_post_ra>
